<compile_context>
chip_gen: v5e
topology: v5e:2x2
jax: 0.10.0
libtpu: 0.0.40
codegen_flags: <defaults>
</compile_context>

<pallas_src>
import functools

import jax
import jax.numpy as jnp
from jax.experimental import pallas as pl
from jax.experimental.pallas import tpu as pltpu


# --------------------------------------------------------------------------- #
# Pallas kernel: fused point-conv contraction + folded BatchNorm + activation #
# --------------------------------------------------------------------------- #
def _pointconv_bn_act_kernel(g_ref, w_ref, scale_ref, shift_ref, o_ref, *,
                             activation):
    # g_ref:     (TM, K)  bf16  gathered neighborhoods, one row per sampled center
    # w_ref:     (K, Cp)  bf16  conv weight, lane-padded to Cp (multiple of 128), resident
    # scale_ref: (1, Cp)  f32   folded BN scale  = gamma / sqrt(var + eps)
    # shift_ref: (1, Cp)  f32   folded BN shift  = beta - mean * scale
    # o_ref:     (TM, Cp) f32   lane-dense output block (unmasked vst)
    acc = jnp.dot(g_ref[...], w_ref[...], preferred_element_type=jnp.float32)
    y = acc * scale_ref[...] + shift_ref[...]
    if activation == "silu":
        y = y * jax.nn.sigmoid(y)          # sigmoid on EUP, mul on VPU
    elif activation == "relu":
        y = jnp.maximum(y, 0.0)
    o_ref[...] = y


def _pick_row_tile(m):
    # Full-MXU row tiles (128 matches v5e's 128x128 MXU; 256 matches v6e/v7x).
    # Keep the tile small enough that the parallel M axis retains >= 2 grid
    # steps when M allows it, so both v7x TensorCores get work.
    return 256 if m >= 512 else 128


def pointconv_bn_act(grouped_flat, w_flat, scale, shift, *, activation):
    """Fused (M, K) @ (K, Cout) + BN affine + activation on the MXU.

    grouped_flat: (M, K) f32,  M = B*npoint,  K = ns*(3+Cin)
    w_flat:       (K, Cout) f32
    scale, shift: (Cout,) f32  (folded eval-mode BatchNorm1d)
    returns:      (M, Cout) f32
    """
    M, K = grouped_flat.shape
    Cout = w_flat.shape[1]

    # Lane-dense output: pad Cout to a multiple of 128 so stores are unmasked.
    Cp = max(128, pl.cdiv(Cout, 128) * 128)
    tm = _pick_row_tile(M)
    Mp = pl.cdiv(M, tm) * tm                      # pad rows instead of asserting M % tm == 0

    # bf16 operands (MXU-native), f32 accumulation inside the kernel.
    g = jnp.pad(grouped_flat, ((0, Mp - M), (0, 0))).astype(jnp.bfloat16)
    w = jnp.pad(w_flat, ((0, 0), (0, Cp - Cout))).astype(jnp.bfloat16)
    sc = jnp.pad(scale, (0, Cp - Cout)).astype(jnp.float32).reshape(1, Cp)
    sh = jnp.pad(shift, (0, Cp - Cout)).astype(jnp.float32).reshape(1, Cp)

    # VMEM per step (double-buffered activation + resident weight/scale/shift):
    #   2*(tm*K*2 + tm*Cp*4) + K*Cp*2 bytes  -> well under the 32 MiB scoped /
    #   64 MiB physical limit on v7x for any realistic K = ns*(3+Cin).
    kernel = functools.partial(_pointconv_bn_act_kernel, activation=activation)
    out = pl.pallas_call(
        kernel,
        out_shape=jax.ShapeDtypeStruct((Mp, Cp), jnp.float32),
        grid=(Mp // tm,),
        in_specs=[
            pl.BlockSpec((tm, K), lambda i: (i, 0)),   # streamed activations
            pl.BlockSpec((K, Cp), lambda i: (0, 0)),   # VMEM-resident weight
            pl.BlockSpec((1, Cp), lambda i: (0, 0)),   # resident BN scale
            pl.BlockSpec((1, Cp), lambda i: (0, 0)),   # resident BN shift
        ],
        out_specs=pl.BlockSpec((tm, Cp), lambda i: (i, 0)),
        compiler_params=pltpu.CompilerParams(
            dimension_semantics=("parallel",)),        # megacore / v7x 2-TC sharding
    )(g, w, sc, sh)
    return out[:M, :Cout]


# --------------------------------------------------------------------------- #
# JAX glue: sampling / grouping (data-dependent gather)                       #
# --------------------------------------------------------------------------- #
def furthest_point_sample(xyz, npoint):
    """xyz (B,N,3) -> (B,npoint) int32.  pointnet2-style FPS starting at index 0."""
    B, N, _ = xyz.shape

    def body(i, state):
        inds, dists, farthest = state
        inds = inds.at[:, i].set(farthest)
        centroid = jnp.take_along_axis(xyz, farthest[:, None, None], axis=1)  # (B,1,3)
        d = jnp.sum((xyz - centroid) ** 2, axis=-1)                           # (B,N)
        dists = jnp.minimum(dists, d)
        farthest = jnp.argmax(dists, axis=-1).astype(jnp.int32)
        return inds, dists, farthest

    state0 = (jnp.zeros((B, npoint), jnp.int32),
              jnp.full((B, N), 1e10, jnp.float32),
              jnp.zeros((B,), jnp.int32))
    inds, _, _ = jax.lax.fori_loop(0, npoint, body, state0)
    return inds


def ball_query(radius, nsample, xyz, new_xyz):
    """(B,N,3),(B,np,3) -> (B,np,nsample) int32.  Matches pointnet2 ball_query:
    points with d^2 < r^2 taken in index order, slots past the count padded with
    the first hit (all-zero row when the neighborhood is empty)."""
    d2 = jnp.sum((new_xyz[:, :, None, :] - xyz[:, None, :, :]) ** 2, axis=-1)  # (B,np,N)
    mask = d2 < radius * radius
    key = jnp.where(mask, 0, 1).astype(jnp.int32)
    order = jnp.argsort(key, axis=-1, stable=True)    # in-radius indices first, ascending
    idx = order[..., :nsample].astype(jnp.int32)
    cnt = jnp.sum(mask, axis=-1, keepdims=True)
    slot = jnp.arange(nsample)[None, None, :]
    return jnp.where(slot < cnt, idx, idx[..., :1])


# --------------------------------------------------------------------------- #
# Module building blocks                                                      #
# --------------------------------------------------------------------------- #
def conv_bn_layer(xyz, features, p, *, radius, gather_size, stride, activation):
    """ConvBNLayer.forward: Point_Conv (bias=False) -> eval BatchNorm1d -> activation.

    xyz (B,N,3), features (B,N,Cin) -> (new_xyz (B,np,3), y (B,np,Cout))
    """
    B, N, _ = xyz.shape
    Cin = features.shape[-1]
    npoint = -(-N // stride)  # ceil(N / stride)

    inds = furthest_point_sample(xyz, npoint)                                 # (B,np)
    new_xyz = jnp.take_along_axis(xyz, inds[..., None], axis=1)               # (B,np,3)
    nbr = ball_query(radius, gather_size, xyz, new_xyz)                       # (B,np,ns)

    g_xyz = jnp.take_along_axis(xyz[:, None], nbr[..., None], axis=2)         # (B,np,ns,3)
    g_xyz = g_xyz - new_xyz[:, :, None, :]                                    # relative xyz
    g_feat = jnp.take_along_axis(features[:, None], nbr[..., None], axis=2)   # (B,np,ns,Cin)
    grouped = jnp.concatenate([g_xyz, g_feat], axis=-1)                       # (B,np,ns,3+Cin)

    # Flatten in the natural (sample, channel) order -- no transpose of the big
    # activation tensor; the tiny conv weight is re-laid-out instead.
    K = gather_size * (3 + Cin)
    grouped_flat = grouped.reshape(B * npoint, K)

    # Conv2d weight (Cout, 3+Cin, ns) -> (ns*(3+Cin), Cout), matching (s, c) flattening.
    w_flat = jnp.transpose(p["w"], (2, 1, 0)).reshape(K, -1)

    # Fold eval-mode BatchNorm1d into a per-channel affine epilogue.
    scale = p["gamma"] * jax.lax.rsqrt(p["var"] + 1e-5)
    shift = p["beta"] - p["mean"] * scale

    y = pointconv_bn_act(grouped_flat, w_flat, scale, shift, activation=activation)
    return new_xyz, y.reshape(B, npoint, -1)


def bottleneck(xyz, feat, p, *, activation):
    """BottleNeck.forward (variant='b', stride=1, shortcut=False, expansion=1)."""
    new_xyz, out = conv_bn_layer(xyz, feat, p["branch2a"], radius=0.1,
                                 gather_size=1, stride=1, activation=activation)
    new_xyz, out = conv_bn_layer(new_xyz, out, p["branch2b"], radius=0.2,
                                 gather_size=16, stride=1, activation=activation)
    new_xyz, out = conv_bn_layer(new_xyz, out, p["branch2c"], radius=0.1,
                                 gather_size=1, stride=1, activation=None)
    _, short = conv_bn_layer(xyz, feat, p["short"], radius=0.1,
                             gather_size=1, stride=1, activation=None)
    out = out + short
    if activation == "silu":
        out = out * jax.nn.sigmoid(out)
    elif activation == "relu":
        out = jnp.maximum(out, 0.0)
    return new_xyz, out


def csp_rep_layer(xyz, features, params, activation="silu"):
    """CSPRepLayer.forward (inference).  xyz (B,N,3), features (B,N,Cin) -> (B,N,Cout)."""
    _, f1 = conv_bn_layer(xyz, features, params["conv1"], radius=0.1,
                          gather_size=1, stride=1, activation=activation)
    cur_xyz, cur = xyz, f1         # conv1's new_xyz is discarded, as in the torch code
    for blk in params["bottlenecks"]:
        cur_xyz, cur = bottleneck(cur_xyz, cur, blk, activation=activation)
    _, f2 = conv_bn_layer(xyz, features, params["conv2"], radius=0.1,
                          gather_size=1, stride=1, activation=activation)
    out = cur + f2
    if "conv3" in params:
        # torch returns the full (new_points, y) tuple from conv3 in this branch
        return conv_bn_layer(xyz, out, params["conv3"], radius=0.1,
                             gather_size=1, stride=1, activation=activation)
    return out


# --------------------------------------------------------------------------- #
# Parameter construction (deterministic)                                      #
# --------------------------------------------------------------------------- #
def _convbn_params(key, cin, cout, ns):
    kw, kg, kb = jax.random.split(key, 3)
    return {
        "w": 0.1 * jax.random.normal(kw, (cout, 3 + cin, ns), jnp.float32),
        "gamma": 1.0 + 0.1 * jax.random.normal(kg, (cout,), jnp.float32),
        "beta": 0.05 * jax.random.normal(kb, (cout,), jnp.float32),
        "mean": jnp.zeros((cout,), jnp.float32),   # eval-mode running stats
        "var": jnp.ones((cout,), jnp.float32),
    }


def init_csp_params(key, in_channels, out_channels, num_blocks=3, expansion=1.0):
    hidden = int(out_channels * expansion)
    keys = jax.random.split(key, 3 + 4 * num_blocks)
    params = {
        "conv1": _convbn_params(keys[0], in_channels, hidden, 1),
        "conv2": _convbn_params(keys[1], in_channels, hidden, 1),
        "bottlenecks": [],
    }
    k = 2
    for _ in range(num_blocks):
        params["bottlenecks"].append({
            "branch2a": _convbn_params(keys[k + 0], hidden, hidden, 1),
            "branch2b": _convbn_params(keys[k + 1], hidden, hidden, 16),
            "branch2c": _convbn_params(keys[k + 2], hidden, hidden, 1),
            "short":    _convbn_params(keys[k + 3], hidden, hidden, 1),
        })
        k += 4
    if hidden != out_channels:
        params["conv3"] = _convbn_params(keys[k], hidden, out_channels, 1)
    return params


# --------------------------------------------------------------------------- #
# main                                                                        #
# --------------------------------------------------------------------------- #
if __name__ == "__main__":
    B, N = 2, 16
    in_channels, out_channels, num_blocks = 4, 32, 3

    key = jax.random.PRNGKey(0)
    k_pts, k_feat, k_par = jax.random.split(key, 3)
    xyz = jax.random.uniform(k_pts, (B, N, 3), dtype=jnp.float32)
    features = jax.random.normal(k_feat, (B, N, in_channels), dtype=jnp.float32)
    params = init_csp_params(k_par, in_channels, out_channels,
                             num_blocks=num_blocks, expansion=1.0)

    fwd = jax.jit(csp_rep_layer)
    out = fwd(xyz, features, params)
    jax.block_until_ready(out)

    assert out.shape == (B, N, out_channels), out.shape
    assert out.dtype == jnp.float32
    print("KERNEL_OK")
</pallas_src>

<mosaic_0001>
module attributes {stable_mosaic.version = 11 : i64} {
  func.func @_pointconv_bn_act_kernel(%arg0: i32, %arg1: memref<128x7xbf16, #tpu.memory_space<vmem>>, %arg2: memref<7x128xbf16, #tpu.memory_space<vmem>>, %arg3: memref<1x128xf32, #tpu.memory_space<vmem>>, %arg4: memref<1x128xf32, #tpu.memory_space<vmem>>, %arg5: memref<128x128xf32, #tpu.memory_space<vmem>>) attributes {dimension_semantics = [#tpu.dimension_semantics<parallel>], iteration_bounds = array<i64: 1>, scalar_prefetch = 0 : i64, scratch_operands = 0 : i64, tpu.core_type = #tpu.core_type<tc>, window_params = [{transform_indices = @transform_0, window_bounds = array<i64: 128, 7>}, {pipeline_mode = #tpu.pipeline_mode<synchronous>, transform_indices = @transform_1, window_bounds = array<i64: 7, 128>}, {pipeline_mode = #tpu.pipeline_mode<synchronous>, transform_indices = @transform_2, window_bounds = array<i64: 1, 128>}, {pipeline_mode = #tpu.pipeline_mode<synchronous>, transform_indices = @transform_3, window_bounds = array<i64: 1, 128>}, {transform_indices = @transform_4, window_bounds = array<i64: 128, 128>}]} {
    %c0 = arith.constant 0 : index
    %c0_0 = arith.constant 0 : index
    %0 = vector.load %arg1[%c0, %c0_0] : memref<128x7xbf16, #tpu.memory_space<vmem>>, vector<128x7xbf16>
    %c0_1 = arith.constant 0 : index
    %c0_2 = arith.constant 0 : index
    %1 = vector.load %arg2[%c0_1, %c0_2] : memref<7x128xbf16, #tpu.memory_space<vmem>>, vector<7x128xbf16>
    %cst = arith.constant dense<0.000000e+00> : vector<128x128xf32>
    %2 = tpu.matmul %0, %1, %cst {dimension_numbers = #tpu.dot_dimension_numbers<[1], [0], [0], [1], [0, 0, 1, 1], [], []>} : vector<128x7xbf16>, vector<7x128xbf16>, vector<128x128xf32> -> vector<128x128xf32>
    %c0_3 = arith.constant 0 : index
    %c0_4 = arith.constant 0 : index
    %3 = vector.load %arg3[%c0_3, %c0_4] : memref<1x128xf32, #tpu.memory_space<vmem>>, vector<1x128xf32>
    %4 = vector.broadcast %3 : vector<1x128xf32> to vector<128x128xf32>
    %5 = arith.mulf %2, %4 : vector<128x128xf32>
    %c0_5 = arith.constant 0 : index
    %c0_6 = arith.constant 0 : index
    %6 = vector.load %arg4[%c0_5, %c0_6] : memref<1x128xf32, #tpu.memory_space<vmem>>, vector<1x128xf32>
    %7 = vector.broadcast %6 : vector<1x128xf32> to vector<128x128xf32>
    %8 = arith.addf %5, %7 : vector<128x128xf32>
    %9 = arith.negf %8 : vector<128x128xf32>
    %10 = math.exp %9 : vector<128x128xf32>
    %cst_7 = arith.constant 1.000000e+00 : f32
    %11 = vector.broadcast %cst_7 : f32 to vector<128x128xf32>
    %12 = arith.addf %11, %10 : vector<128x128xf32>
    %13 = arith.divf %11, %12 : vector<128x128xf32>
    %14 = arith.mulf %8, %13 : vector<128x128xf32>
    %c0_8 = arith.constant 0 : index
    %c0_9 = arith.constant 0 : index
    %15 = vector.load %arg5[%c0_8, %c0_9] : memref<128x128xf32, #tpu.memory_space<vmem>>, vector<128x128xf32>
    tpu.vector_store %arg5[%c0_8, %c0_9], %14 {strides = array<i32>} : memref<128x128xf32, #tpu.memory_space<vmem>>, vector<128x128xf32>,
    return
  }
  func.func @transform_0(%arg0: i32) -> (i32, i32) {
    %c0_i32 = arith.constant 0 : i32
    %c0_i32_0 = arith.constant 0 : i32
    return %arg0, %c0_i32 : i32, i32
  }
  func.func @transform_1(%arg0: i32) -> (i32, i32) {
    %c0_i32 = arith.constant 0 : i32
    %c0_i32_0 = arith.constant 0 : i32
    %c0_i32_1 = arith.constant 0 : i32
    return %c0_i32, %c0_i32_0 : i32, i32
  }
  func.func @transform_2(%arg0: i32) -> (i32, i32) {
    %c0_i32 = arith.constant 0 : i32
    %c0_i32_0 = arith.constant 0 : i32
    %c0_i32_1 = arith.constant 0 : i32
    return %c0_i32, %c0_i32_0 : i32, i32
  }
  func.func @transform_3(%arg0: i32) -> (i32, i32) {
    %c0_i32 = arith.constant 0 : i32
    %c0_i32_0 = arith.constant 0 : i32
    %c0_i32_1 = arith.constant 0 : i32
    return %c0_i32, %c0_i32_0 : i32, i32
  }
  func.func @transform_4(%arg0: i32) -> (i32, i32) {
    %c0_i32 = arith.constant 0 : i32
    %c0_i32_0 = arith.constant 0 : i32
    return %arg0, %c0_i32 : i32, i32
  }
}

module attributes {stable_mosaic.version = 11 : i64} {
  func.func @_pointconv_bn_act_kernel(%arg0: i32, %arg1: memref<128x35xbf16, #tpu.memory_space<vmem>>, %arg2: memref<35x128xbf16, #tpu.memory_space<vmem>>, %arg3: memref<1x128xf32, #tpu.memory_space<vmem>>, %arg4: memref<1x128xf32, #tpu.memory_space<vmem>>, %arg5: memref<128x128xf32, #tpu.memory_space<vmem>>) attributes {dimension_semantics = [#tpu.dimension_semantics<parallel>], iteration_bounds = array<i64: 1>, scalar_prefetch = 0 : i64, scratch_operands = 0 : i64, tpu.core_type = #tpu.core_type<tc>, window_params = [{transform_indices = @transform_0, window_bounds = array<i64: 128, 35>}, {pipeline_mode = #tpu.pipeline_mode<synchronous>, transform_indices = @transform_1, window_bounds = array<i64: 35, 128>}, {pipeline_mode = #tpu.pipeline_mode<synchronous>, transform_indices = @transform_2, window_bounds = array<i64: 1, 128>}, {pipeline_mode = #tpu.pipeline_mode<synchronous>, transform_indices = @transform_3, window_bounds = array<i64: 1, 128>}, {transform_indices = @transform_4, window_bounds = array<i64: 128, 128>}]} {
    %c0 = arith.constant 0 : index
    %c0_0 = arith.constant 0 : index
    %0 = vector.load %arg1[%c0, %c0_0] : memref<128x35xbf16, #tpu.memory_space<vmem>>, vector<128x35xbf16>
    %c0_1 = arith.constant 0 : index
    %c0_2 = arith.constant 0 : index
    %1 = vector.load %arg2[%c0_1, %c0_2] : memref<35x128xbf16, #tpu.memory_space<vmem>>, vector<35x128xbf16>
    %cst = arith.constant dense<0.000000e+00> : vector<128x128xf32>
    %2 = tpu.matmul %0, %1, %cst {dimension_numbers = #tpu.dot_dimension_numbers<[1], [0], [0], [1], [0, 0, 1, 1], [], []>} : vector<128x35xbf16>, vector<35x128xbf16>, vector<128x128xf32> -> vector<128x128xf32>
    %c0_3 = arith.constant 0 : index
    %c0_4 = arith.constant 0 : index
    %3 = vector.load %arg3[%c0_3, %c0_4] : memref<1x128xf32, #tpu.memory_space<vmem>>, vector<1x128xf32>
    %4 = vector.broadcast %3 : vector<1x128xf32> to vector<128x128xf32>
    %5 = arith.mulf %2, %4 : vector<128x128xf32>
    %c0_5 = arith.constant 0 : index
    %c0_6 = arith.constant 0 : index
    %6 = vector.load %arg4[%c0_5, %c0_6] : memref<1x128xf32, #tpu.memory_space<vmem>>, vector<1x128xf32>
    %7 = vector.broadcast %6 : vector<1x128xf32> to vector<128x128xf32>
    %8 = arith.addf %5, %7 : vector<128x128xf32>
    %c0_7 = arith.constant 0 : index
    %c0_8 = arith.constant 0 : index
    %9 = vector.load %arg5[%c0_7, %c0_8] : memref<128x128xf32, #tpu.memory_space<vmem>>, vector<128x128xf32>
    tpu.vector_store %arg5[%c0_7, %c0_8], %8 {strides = array<i32>} : memref<128x128xf32, #tpu.memory_space<vmem>>, vector<128x128xf32>,
    return
  }
  func.func @transform_0(%arg0: i32) -> (i32, i32) {
    %c0_i32 = arith.constant 0 : i32
    %c0_i32_0 = arith.constant 0 : i32
    return %arg0, %c0_i32 : i32, i32
  }
  func.func @transform_1(%arg0: i32) -> (i32, i32) {
    %c0_i32 = arith.constant 0 : i32
    %c0_i32_0 = arith.constant 0 : i32
    %c0_i32_1 = arith.constant 0 : i32
    return %c0_i32, %c0_i32_0 : i32, i32
  }
  func.func @transform_2(%arg0: i32) -> (i32, i32) {
    %c0_i32 = arith.constant 0 : i32
    %c0_i32_0 = arith.constant 0 : i32
    %c0_i32_1 = arith.constant 0 : i32
    return %c0_i32, %c0_i32_0 : i32, i32
  }
  func.func @transform_3(%arg0: i32) -> (i32, i32) {
    %c0_i32 = arith.constant 0 : i32
    %c0_i32_0 = arith.constant 0 : i32
    %c0_i32_1 = arith.constant 0 : i32
    return %c0_i32, %c0_i32_0 : i32, i32
  }
  func.func @transform_4(%arg0: i32) -> (i32, i32) {
    %c0_i32 = arith.constant 0 : i32
    %c0_i32_0 = arith.constant 0 : i32
    return %arg0, %c0_i32 : i32, i32
  }
}

module attributes {stable_mosaic.version = 11 : i64} {
  func.func @_pointconv_bn_act_kernel(%arg0: i32, %arg1: memref<128x35xbf16, #tpu.memory_space<vmem>>, %arg2: memref<35x128xbf16, #tpu.memory_space<vmem>>, %arg3: memref<1x128xf32, #tpu.memory_space<vmem>>, %arg4: memref<1x128xf32, #tpu.memory_space<vmem>>, %arg5: memref<128x128xf32, #tpu.memory_space<vmem>>) attributes {dimension_semantics = [#tpu.dimension_semantics<parallel>], iteration_bounds = array<i64: 1>, scalar_prefetch = 0 : i64, scratch_operands = 0 : i64, tpu.core_type = #tpu.core_type<tc>, window_params = [{transform_indices = @transform_0, window_bounds = array<i64: 128, 35>}, {pipeline_mode = #tpu.pipeline_mode<synchronous>, transform_indices = @transform_1, window_bounds = array<i64: 35, 128>}, {pipeline_mode = #tpu.pipeline_mode<synchronous>, transform_indices = @transform_2, window_bounds = array<i64: 1, 128>}, {pipeline_mode = #tpu.pipeline_mode<synchronous>, transform_indices = @transform_3, window_bounds = array<i64: 1, 128>}, {transform_indices = @transform_4, window_bounds = array<i64: 128, 128>}]} {
    %c0 = arith.constant 0 : index
    %c0_0 = arith.constant 0 : index
    %0 = vector.load %arg1[%c0, %c0_0] : memref<128x35xbf16, #tpu.memory_space<vmem>>, vector<128x35xbf16>
    %c0_1 = arith.constant 0 : index
    %c0_2 = arith.constant 0 : index
    %1 = vector.load %arg2[%c0_1, %c0_2] : memref<35x128xbf16, #tpu.memory_space<vmem>>, vector<35x128xbf16>
    %cst = arith.constant dense<0.000000e+00> : vector<128x128xf32>
    %2 = tpu.matmul %0, %1, %cst {dimension_numbers = #tpu.dot_dimension_numbers<[1], [0], [0], [1], [0, 0, 1, 1], [], []>} : vector<128x35xbf16>, vector<35x128xbf16>, vector<128x128xf32> -> vector<128x128xf32>
    %c0_3 = arith.constant 0 : index
    %c0_4 = arith.constant 0 : index
    %3 = vector.load %arg3[%c0_3, %c0_4] : memref<1x128xf32, #tpu.memory_space<vmem>>, vector<1x128xf32>
    %4 = vector.broadcast %3 : vector<1x128xf32> to vector<128x128xf32>
    %5 = arith.mulf %2, %4 : vector<128x128xf32>
    %c0_5 = arith.constant 0 : index
    %c0_6 = arith.constant 0 : index
    %6 = vector.load %arg4[%c0_5, %c0_6] : memref<1x128xf32, #tpu.memory_space<vmem>>, vector<1x128xf32>
    %7 = vector.broadcast %6 : vector<1x128xf32> to vector<128x128xf32>
    %8 = arith.addf %5, %7 : vector<128x128xf32>
    %9 = arith.negf %8 : vector<128x128xf32>
    %10 = math.exp %9 : vector<128x128xf32>
    %cst_7 = arith.constant 1.000000e+00 : f32
    %11 = vector.broadcast %cst_7 : f32 to vector<128x128xf32>
    %12 = arith.addf %11, %10 : vector<128x128xf32>
    %13 = arith.divf %11, %12 : vector<128x128xf32>
    %14 = arith.mulf %8, %13 : vector<128x128xf32>
    %c0_8 = arith.constant 0 : index
    %c0_9 = arith.constant 0 : index
    %15 = vector.load %arg5[%c0_8, %c0_9] : memref<128x128xf32, #tpu.memory_space<vmem>>, vector<128x128xf32>
    tpu.vector_store %arg5[%c0_8, %c0_9], %14 {strides = array<i32>} : memref<128x128xf32, #tpu.memory_space<vmem>>, vector<128x128xf32>,
    return
  }
  func.func @transform_0(%arg0: i32) -> (i32, i32) {
    %c0_i32 = arith.constant 0 : i32
    %c0_i32_0 = arith.constant 0 : i32
    return %arg0, %c0_i32 : i32, i32
  }
  func.func @transform_1(%arg0: i32) -> (i32, i32) {
    %c0_i32 = arith.constant 0 : i32
    %c0_i32_0 = arith.constant 0 : i32
    %c0_i32_1 = arith.constant 0 : i32
    return %c0_i32, %c0_i32_0 : i32, i32
  }
  func.func @transform_2(%arg0: i32) -> (i32, i32) {
    %c0_i32 = arith.constant 0 : i32
    %c0_i32_0 = arith.constant 0 : i32
    %c0_i32_1 = arith.constant 0 : i32
    return %c0_i32, %c0_i32_0 : i32, i32
  }
  func.func @transform_3(%arg0: i32) -> (i32, i32) {
    %c0_i32 = arith.constant 0 : i32
    %c0_i32_0 = arith.constant 0 : i32
    %c0_i32_1 = arith.constant 0 : i32
    return %c0_i32, %c0_i32_0 : i32, i32
  }
  func.func @transform_4(%arg0: i32) -> (i32, i32) {
    %c0_i32 = arith.constant 0 : i32
    %c0_i32_0 = arith.constant 0 : i32
    return %arg0, %c0_i32 : i32, i32
  }
}

module attributes {stable_mosaic.version = 11 : i64} {
  func.func @_pointconv_bn_act_kernel(%arg0: i32, %arg1: memref<128x560xbf16, #tpu.memory_space<vmem>>, %arg2: memref<560x128xbf16, #tpu.memory_space<vmem>>, %arg3: memref<1x128xf32, #tpu.memory_space<vmem>>, %arg4: memref<1x128xf32, #tpu.memory_space<vmem>>, %arg5: memref<128x128xf32, #tpu.memory_space<vmem>>) attributes {dimension_semantics = [#tpu.dimension_semantics<parallel>], iteration_bounds = array<i64: 1>, scalar_prefetch = 0 : i64, scratch_operands = 0 : i64, tpu.core_type = #tpu.core_type<tc>, window_params = [{transform_indices = @transform_0, window_bounds = array<i64: 128, 560>}, {pipeline_mode = #tpu.pipeline_mode<synchronous>, transform_indices = @transform_1, window_bounds = array<i64: 560, 128>}, {pipeline_mode = #tpu.pipeline_mode<synchronous>, transform_indices = @transform_2, window_bounds = array<i64: 1, 128>}, {pipeline_mode = #tpu.pipeline_mode<synchronous>, transform_indices = @transform_3, window_bounds = array<i64: 1, 128>}, {transform_indices = @transform_4, window_bounds = array<i64: 128, 128>}]} {
    %c0 = arith.constant 0 : index
    %c0_0 = arith.constant 0 : index
    %0 = vector.load %arg1[%c0, %c0_0] : memref<128x560xbf16, #tpu.memory_space<vmem>>, vector<128x560xbf16>
    %c0_1 = arith.constant 0 : index
    %c0_2 = arith.constant 0 : index
    %1 = vector.load %arg2[%c0_1, %c0_2] : memref<560x128xbf16, #tpu.memory_space<vmem>>, vector<560x128xbf16>
    %cst = arith.constant dense<0.000000e+00> : vector<128x128xf32>
    %2 = tpu.matmul %0, %1, %cst {dimension_numbers = #tpu.dot_dimension_numbers<[1], [0], [0], [1], [0, 0, 1, 1], [], []>} : vector<128x560xbf16>, vector<560x128xbf16>, vector<128x128xf32> -> vector<128x128xf32>
    %c0_3 = arith.constant 0 : index
    %c0_4 = arith.constant 0 : index
    %3 = vector.load %arg3[%c0_3, %c0_4] : memref<1x128xf32, #tpu.memory_space<vmem>>, vector<1x128xf32>
    %4 = vector.broadcast %3 : vector<1x128xf32> to vector<128x128xf32>
    %5 = arith.mulf %2, %4 : vector<128x128xf32>
    %c0_5 = arith.constant 0 : index
    %c0_6 = arith.constant 0 : index
    %6 = vector.load %arg4[%c0_5, %c0_6] : memref<1x128xf32, #tpu.memory_space<vmem>>, vector<1x128xf32>
    %7 = vector.broadcast %6 : vector<1x128xf32> to vector<128x128xf32>
    %8 = arith.addf %5, %7 : vector<128x128xf32>
    %9 = arith.negf %8 : vector<128x128xf32>
    %10 = math.exp %9 : vector<128x128xf32>
    %cst_7 = arith.constant 1.000000e+00 : f32
    %11 = vector.broadcast %cst_7 : f32 to vector<128x128xf32>
    %12 = arith.addf %11, %10 : vector<128x128xf32>
    %13 = arith.divf %11, %12 : vector<128x128xf32>
    %14 = arith.mulf %8, %13 : vector<128x128xf32>
    %c0_8 = arith.constant 0 : index
    %c0_9 = arith.constant 0 : index
    %15 = vector.load %arg5[%c0_8, %c0_9] : memref<128x128xf32, #tpu.memory_space<vmem>>, vector<128x128xf32>
    tpu.vector_store %arg5[%c0_8, %c0_9], %14 {strides = array<i32>} : memref<128x128xf32, #tpu.memory_space<vmem>>, vector<128x128xf32>,
    return
  }
  func.func @transform_0(%arg0: i32) -> (i32, i32) {
    %c0_i32 = arith.constant 0 : i32
    %c0_i32_0 = arith.constant 0 : i32
    return %arg0, %c0_i32 : i32, i32
  }
  func.func @transform_1(%arg0: i32) -> (i32, i32) {
    %c0_i32 = arith.constant 0 : i32
    %c0_i32_0 = arith.constant 0 : i32
    %c0_i32_1 = arith.constant 0 : i32
    return %c0_i32, %c0_i32_0 : i32, i32
  }
  func.func @transform_2(%arg0: i32) -> (i32, i32) {
    %c0_i32 = arith.constant 0 : i32
    %c0_i32_0 = arith.constant 0 : i32
    %c0_i32_1 = arith.constant 0 : i32
    return %c0_i32, %c0_i32_0 : i32, i32
  }
  func.func @transform_3(%arg0: i32) -> (i32, i32) {
    %c0_i32 = arith.constant 0 : i32
    %c0_i32_0 = arith.constant 0 : i32
    %c0_i32_1 = arith.constant 0 : i32
    return %c0_i32, %c0_i32_0 : i32, i32
  }
  func.func @transform_4(%arg0: i32) -> (i32, i32) {
    %c0_i32 = arith.constant 0 : i32
    %c0_i32_0 = arith.constant 0 : i32
    return %arg0, %c0_i32 : i32, i32
  }
}

</mosaic_0001>

<bundles_post_ra>
// kernel: custom-call.74
= control target key start
LH: loop header
LB: loop body
LE: loop exit
PB: predicated region body
PF: predicated region fallthrough
CT: control target
= control target key end

     0   :  { %s6_s0 = inlined_call_operand.vmem [shape: f32[2,16], index: 0, kind: output, shape index: {}]  }

// kernel: csp_rep_layer.15
= control target key start
LH: loop header
LB: loop body
LE: loop exit
PB: predicated region body
PF: predicated region fallthrough
CT: control target
= control target key end

     0   :  { %vm119_vm0 = vcmask 1040384   ;;  %vm120_vm1 = vcmask 1041408   ;;  %v705_v1 = vmov 65535   ;;  %vm94_vm2 = vcmask 285696   ;;  %s1085_s1 = inlined_call_operand.vmem [shape: bf16[35,128], index: 1, kind: input, shape index: {}]   ;;  %s1086_s2 = inlined_call_operand.vmem [shape: f32[1,128], index: 2, kind: input, shape index: {}]   ;;  %s1087_s3 = inlined_call_operand.vmem [shape: f32[1,128], index: 3, kind: input, shape index: {}]   ;;  %s1088_s0 = inlined_call_operand.vmem [shape: bf16[128,35], index: 0, kind: input, shape index: {}]   ;;  %s1089_s4 = inlined_call_operand.vmem [shape: f32[128,128], index: 4, kind: output, shape index: {}]  }
   0x1   :  { %v38_v0 = vld [vmem:[%s1085_s1 + $0x10] sm:$0x3]  ;;  %v121_v2 = vsel %vm119_vm0, 4294967295, %v705_v1  ;;  %v628_v7 = vld [vmem:[%s1085_s1 + $0x8] sm:$0xff]  ;;  %v627_v8 = vld [vmem:[%s1085_s1] sm:$0xff] }
   0x2   :  { %v88_v3 = vunpack.c.l.b16 %v38_v0  ;;  %v122_v4 = vsel %vm120_vm1, %v121_v2, 0  ;;  %v619_v9 = vld [vmem:[%s1088_s0] sm:$0xff]  ;;  %v621_v10 = vld [vmem:[%s1088_s0 + $0x10] sm:$0xff]  ;;  %v620_v13 = vld [vmem:[%s1088_s0 + $0x8] sm:$0xff] }
   0x3   :  { %v623_v11 = vld [vmem:[%s1088_s0 + $0x20] sm:$0xff]  ;;  %v625_v12 = vld [vmem:[%s1088_s0 + $0x30] sm:$0xff]  ;;  %v622_v14 = vld [vmem:[%s1088_s0 + $0x18] sm:$0xff] }
   0x4   :  { %v91_v5 = vpack.c.b16 %v88_v3, %v88_v3  ;;  %v624_v15 = vld [vmem:[%s1088_s0 + $0x28] sm:$0xff]  ;;  %v626_v16 = vld [vmem:[%s1088_s0 + $0x38] sm:$0xff]  ;;  %v775_v17 = vld [vmem:[%s1086_s2] ss:$0 sm:$0xff] }
   0x5   :  { %v780_v18 = vld [vmem:[%s1087_s3] ss:$0 sm:$0xff] }
   0x6   :  { %v124_v6 = vand.u32 %v122_v4, %v91_v5 }
   0x8   :  { %131 = vmatpush.bf16.msra.mxu0 %v124_v6  ;;  %629 = vmatpush.bf16.msra.mxu1 %v124_v6 }
   0x9   :  { %630 = vmatpush.bf16.msra.mxu2 %v124_v6  ;;  %631 = vmatpush.bf16.msra.mxu3 %v124_v6 }
   0xc   :  { %132 = vmatpush.bf16.msra.mxu0 %v628_v7  ;;  %632 = vmatpush.bf16.msra.mxu1 %v628_v7 }
   0xd   :  { %633 = vmatpush.bf16.msra.mxu2 %v628_v7  ;;  %634 = vmatpush.bf16.msra.mxu3 %v628_v7 }
  0x10   :  { %133 = vmatpush.bf16.msra.mxu0 %v627_v8  ;;  %635 = vmatpush.bf16.msra.mxu1 %v627_v8 }
  0x11   :  { %636 = vmatpush.bf16.msra.mxu2 %v627_v8  ;;  %637 = vmatpush.bf16.msra.mxu3 %v627_v8 }
  0x13   :  { %595 = vmatmul.msk.bf16.vlgmr.msra.gmra.mxu0 %vm94_vm2, %v619_v9  ;;  %597 = vmatmul.msk.bf16.vlgmr.msra.gmra.mxu1 %vm94_vm2, %v621_v10 }
  0x14   :  { %599 = vmatmul.msk.bf16.vlgmr.msra.gmra.mxu2 %vm94_vm2, %v623_v11  ;;  %601 = vmatmul.msk.bf16.vlgmr.msra.gmra.mxu3 %vm94_vm2, %v625_v12 }
  0x23   :  { %596 = vmatmul.msk.bf16.gmra.mxu0 %vm94_vm2, %v620_v13  ;;  %598 = vmatmul.msk.bf16.gmra.mxu1 %vm94_vm2, %v622_v14 }
  0x24   :  { %600 = vmatmul.msk.bf16.gmra.mxu2 %vm94_vm2, %v624_v15  ;;  %602 = vmatmul.msk.bf16.gmra.mxu3 %vm94_vm2, %v626_v16 }
  0x90   :  { %v135_v19 = vpop.f32.mrf.mxu0  ;;  %v145_v20 = vpop.f32.mrf.mxu1 }
  0x91   :  { %v179_v21 = vmul.f32 %v775_v17, %v135_v19  ;;  %v183_v22 = vmul.f32 %v775_v17, %v145_v20 }
  0x93   :  { %v785_v23 = vadd.f32 %v780_v18, %v179_v21  ;;  %v788_v24 = vadd.f32 %v780_v18, %v183_v22 }
  0x95   :  { %v603_v25 = vmul.f32 -1.442695, %v785_v23  ;;  %v607_v26 = vmul.f32 -1.442695, %v788_v24 }
  0x97   :  { %641 = vpow2.f32 %v603_v25  ;;  %v155_v27 = vpop.f32.mrf.mxu2  ;;  %v165_v28 = vpop.f32.mrf.mxu3 }
  0x98   :  { %643 = vpow2.f32 %v607_v26  ;;  %v187_v29 = vmul.f32 %v775_v17, %v155_v27  ;;  %v191_v30 = vmul.f32 %v775_v17, %v165_v28  ;;  %v137_v31 = vpop.f32.mrf.mxu0  ;;  %v147_v32 = vpop.f32.mrf.mxu1 }
  0x99   :  { %v180_v33 = vmul.f32 %v775_v17, %v137_v31  ;;  %v184_v34 = vmul.f32 %v775_v17, %v147_v32 }
  0x9a   :  { %v797_v35 = vadd.f32 %v780_v18, %v187_v29  ;;  %v800_v36 = vadd.f32 %v780_v18, %v191_v30 }
  0x9b   :  { %v803_v37 = vadd.f32 %v780_v18, %v180_v33  ;;  %v806_v38 = vadd.f32 %v780_v18, %v184_v34 }
  0x9c   :  { %v611_v39 = vmul.f32 -1.442695, %v797_v35  ;;  %v615_v40 = vmul.f32 -1.442695, %v800_v36 }
  0x9d   :  { %v642_v41 = vpop.eup %641  ;;  %v604_v44 = vmul.f32 -1.442695, %v803_v37  ;;  %v608_v46 = vmul.f32 -1.442695, %v806_v38 }
  0x9e   :  { %v644_v42 = vpop.eup %643  ;;  %v263_v43 = vadd.f32 1.0, %v642_v41  ;;  %645 = vpow2.f32 %v611_v39 }
  0x9f   :  { %v811_v45 = vadd.f32 1.0, %v644_v42  ;;  %647 = vpow2.f32 %v615_v40  ;;  %v157_v47 = vpop.f32.mrf.mxu2  ;;  %v167_v49 = vpop.f32.mrf.mxu3 }
  0xa0   :  { %649 = vrcp.f32 %v263_v43  ;;  %v188_v48 = vmul.f32 %v775_v17, %v157_v47  ;;  %v288_v50 = vand.u32 2147483647, %v263_v43  ;;  %v290_v51 = vand.u32 2147483648, %v263_v43  ;;  %v140_v52 = vpop.f32.mrf.mxu0  ;;  %v150_v60 = vpop.f32.mrf.mxu1 }
  0xa1   :  { %651 = vrcp.f32 %v811_v45  ;;  %v348_v54 = vand.u32 2147483647, %v811_v45  ;;  %v350_v57 = vand.u32 2147483648, %v811_v45  ;;  %v192_v59 = vmul.f32 %v775_v17, %v167_v49 }
  0xa2   :  { %653 = vpow2.f32 %v604_v44  ;;  %v818_v55 = vadd.f32 %v780_v18, %v188_v48  ;;  %vm284_vm3 = vweird.f32 %v263_v43  ;;  %vm344_vm4 = vweird.f32 %v811_v45 }
  0xa3   :  { %655 = vpow2.f32 %v608_v46  ;;  %v181_v63 = vmul.f32 %v775_v17, %v140_v52  ;;  %vm828_vm5 = vcmp.eq.f32.partialorder %v288_v50, 8.507059e+37  ;;  %v291_v3 = vor.u32 1.1754944e-38, %v290_v51 }
  0xa4   :  { %v646_v53 = vpop.eup %645  ;;  %vm834_vm6 = vcmp.eq.f32.partialorder %v348_v54, 8.507059e+37  ;;  %v612_v7 = vmul.f32 -1.442695, %v818_v55  ;;  %v185_v8 = vmul.f32 %v775_v17, %v150_v60  ;;  %v351_v11 = vor.u32 1.1754944e-38, %v350_v57 }
  0xa5   :  { %v648_v56 = vpop.eup %647  ;;  %v821_v58 = vadd.f32 1.0, %v646_v53  ;;  %v842_v12 = vadd.f32 %v780_v18, %v192_v59  ;;  %v847_v16 = vadd.f32 %v780_v18, %v181_v63 }
  0xa6   :  { %v650_v61 = vpop.eup %649  ;;  %v825_v62 = vadd.f32 1.0, %v648_v56  ;;  %v854_v25 = vadd.f32 %v780_v18, %v185_v8 }
  0xa7   :  { %v652_v0 = vpop.eup %651  ;;  %v280_v1 = vmul.f32 %v650_v61, %v263_v43  ;;  %657 = vrcp.f32 %v821_v58  ;;  %v408_v14 = vand.u32 2147483647, %v821_v58  ;;  %v410_v15 = vand.u32 2147483648, %v821_v58 }
  0xa8   :  { %v654_v4 = vpop.eup %653  ;;  %v340_v5 = vmul.f32 %v652_v0, %v811_v45  ;;  %659 = vrcp.f32 %v825_v62  ;;  %vm285_vm7 = vweird.f32 %v650_v61  ;;  %vm345_vm8 = vweird.f32 %v652_v0 }
  0xa9   :  { %v656_v9 = vpop.eup %655  ;;  %v281_v10 = vsub.f32 1.0, %v280_v1  ;;  %v849_v20 = vadd.f32 1.0, %v654_v4  ;;  %661 = vpow2.f32 %v612_v7  ;;  %vm404_vm9 = vweird.f32 %v821_v58  ;;  %vm286_vm10 = vmor %vm284_vm3, %vm285_vm7 }
  0xaa   :  { %v341_v13 = vsub.f32 1.0, %v340_v5  ;;  %v851_v21 = vadd.f32 1.0, %v656_v9  ;;  %v468_v28 = vand.u32 2147483647, %v825_v62  ;;  %vm861_vm11 = vcmp.eq.f32.partialorder %v408_v14, 8.507059e+37  ;;  %vm346_vm13 = vmor %vm344_vm4, %vm345_vm8 }
  0xab   :  { %v282_v19 = vmul.f32 %v650_v61, %v281_v10  ;;  %663 = vrcp.f32 %v849_v20  ;;  %v411_v32 = vor.u32 1.1754944e-38, %v410_v15  ;;  %vm464_vm12 = vweird.f32 %v825_v62  ;;  %v160_v10 = vpop.f32.mrf.mxu2 }
  0xac   :  { %v342_v22 = vmul.f32 %v652_v0, %v341_v13  ;;  %v470_v39 = vand.u32 2147483648, %v825_v62  ;;  %665 = vrcp.f32 %v851_v21  ;;  %v616_v40 = vmul.f32 -1.442695, %v842_v12 }
  0xad   :  { %v658_v26 = vpop.eup %657  ;;  %v283_v27 = vadd.f32 %v650_v61, %v282_v19  ;;  %vm878_vm14 = vcmp.eq.f32.partialorder %v468_v28, 8.507059e+37  ;;  %v303_v48 = vand.u32 2147483647, %v849_v20  ;;  %vm299_vm0 = vweird.f32 %v849_v20  ;;  %v170_v19 = vpop.f32.mrf.mxu3 }
  0xae   :  { %v343_v29 = vadd.f32 %v652_v0, %v342_v22  ;;  %v400_v30 = vmul.f32 %v658_v26, %v821_v58  ;;  %v660_v33 = vpop.eup %659  ;;  %vm405_vm15 = vweird.f32 %v658_v26  ;;  %667 = vpow2.f32 %v616_v40  ;;  %v142_v22 = vpop.f32.mrf.mxu0 }
  0xaf   :  { %v287_v34 = vsel %vm286_vm10, %v650_v61, %v283_v27  ;;  %v460_v44 = vmul.f32 %v660_v33, %v825_v62  ;;  %v662_v49 = vpop.eup %661  ;;  %vm465_vm1 = vweird.f32 %v660_v33  ;;  %vm406_vm2 = vmor %vm404_vm9, %vm405_vm15  ;;  %vm896_vm3 = vcmp.eq.f32.partialorder %v303_v48, 8.507059e+37 }
  0xb0   :  { %v292_v41 = vsel %vm828_vm5, %v291_v3, %v287_v34  ;;  %v347_v42 = vsel %vm346_vm13, %v652_v0, %v343_v29  ;;  %v401_v43 = vsub.f32 1.0, %v400_v30  ;;  %v888_v54 = vadd.f32 1.0, %v662_v49  ;;  %vm466_vm4 = vmor %vm464_vm12, %vm465_vm1 }
  0xb1   :  { %v519_v46 = vmul.f32 %v292_v41, %v785_v23  ;;  %v352_v47 = vsel %vm834_vm6, %v351_v11, %v347_v42  ;;  %v461_v52 = vsub.f32 1.0, %v460_v44  ;;  %v664_v53 = vpop.eup %663  ;;  %v471_v23 = vor.u32 1.1754944e-38, %v470_v39  ;;  %v152_v44 = vpop.f32.mrf.mxu1 }
  0xb2   :  { %v523_v50 = vmul.f32 %v352_v47, %v788_v24  ;;  %v402_v51 = vmul.f32 %v658_v26, %v401_v43  ;;  %v295_v57 = vmul.f32 %v664_v53, %v849_v20  ;;  %v666_v59 = vpop.eup %665  ;;  %v305_v61 = vand.u32 2147483648, %v849_v20 }
  0xb3   :  { %535 = vst [vmem:[%s1089_s4] sm:$0xff] %v519_v46  ;;  %v462_v24 = vmul.f32 %v660_v33, %v461_v52  ;;  %669 = vrcp.f32 %v888_v54  ;;  %v605_v63 = vmul.f32 -1.442695, %v847_v16  ;;  %v355_v3 = vmul.f32 %v666_v59, %v851_v21 }
  0xb4   :  { %539 = vst [vmem:[%s1089_s4 + $0x20] sm:$0xff] %v523_v50  ;;  %v403_v56 = vadd.f32 %v658_v26, %v402_v51  ;;  %v296_v2 = vsub.f32 1.0, %v295_v57  ;;  %vm300_vm5 = vweird.f32 %v664_v53  ;;  %v363_v58 = vand.u32 2147483647, %v851_v21  ;;  %v668_v11 = vpop.eup %667 }
  0xb5   :  { %v463_v1 = vadd.f32 %v660_v33, %v462_v24  ;;  %v365_v5 = vand.u32 2147483648, %v851_v21  ;;  %v356_v9 = vsub.f32 1.0, %v355_v3  ;;  %vm359_vm6 = vweird.f32 %v851_v21  ;;  %vm301_vm8 = vmor %vm299_vm0, %vm300_vm5  ;;  %v162_v3 = vpop.f32.mrf.mxu2 }
  0xb6   :  { %v407_v0 = vsel %vm406_vm2, %v658_v26, %v403_v56  ;;  %v297_v8 = vmul.f32 %v664_v53, %v296_v2  ;;  %vm360_vm7 = vweird.f32 %v666_v59  ;;  %671 = vpow2.f32 %v605_v63  ;;  %v172_v63 = vpop.f32.mrf.mxu3 }
  0xb7   :  { %v412_v4 = vsel %vm861_vm11, %v411_v32, %v407_v0  ;;  %v467_v7 = vsel %vm466_vm4, %v660_v33, %v463_v1  ;;  %v918_v15 = vadd.f32 1.0, %v668_v11  ;;  %v306_v27 = vor.u32 1.1754944e-38, %v305_v61  ;;  %vm361_vm10 = vmor %vm359_vm6, %vm360_vm7 }
  0xb8   :  { %v527_v6 = vmul.f32 %v412_v4, %v797_v35  ;;  %v472_v13 = vsel %vm878_vm14, %v471_v23, %v467_v7  ;;  %v298_v14 = vadd.f32 %v664_v53, %v297_v8  ;;  %v357_v35 = vmul.f32 %v666_v59, %v356_v9 }
  0xb9   :  { %v531_v62 = vmul.f32 %v472_v13, %v800_v36  ;;  %v670_v26 = vpop.eup %669  ;;  %vm923_vm9 = vcmp.eq.f32.partialorder %v363_v58, 8.507059e+37  ;;  %v609_v29 = vmul.f32 -1.442695, %v854_v25  ;;  %v189_v36 = vmul.f32 %v775_v17, %v160_v10 }
  0xba   :  { %543 = vst [vmem:[%s1089_s4 + $0x40] sm:$0xff] %v527_v6  ;;  %v302_v30 = vsel %vm301_vm8, %v664_v53, %v298_v14  ;;  %v358_v31 = vadd.f32 %v666_v59, %v357_v35  ;;  %v366_v32 = vor.u32 1.1754944e-38, %v365_v5  ;;  %v415_v33 = vmul.f32 %v670_v26, %v888_v54 }
  0xbb   :  { %547 = vst [vmem:[%s1089_s4 + $0x60] sm:$0xff] %v531_v62  ;;  %v307_v20 = vsel %vm896_vm3, %v306_v27, %v302_v30  ;;  %673 = vrcp.f32 %v918_v15  ;;  %v193_v34 = vmul.f32 %v775_v17, %v170_v19  ;;  %v182_v39 = vmul.f32 %v775_v17, %v142_v22 }
  0xbc   :  { %v520_v40 = vmul.f32 %v307_v20, %v803_v37  ;;  %v362_v41 = vsel %vm361_vm10, %v666_v59, %v358_v31  ;;  %v416_v42 = vsub.f32 1.0, %v415_v33  ;;  %v423_v43 = vand.u32 2147483647, %v888_v54  ;;  %v672_v46 = vpop.eup %671 }
  0xbd   :  { %v367_v47 = vsel %vm923_vm9, %v366_v32, %v362_v41  ;;  %v425_v21 = vand.u32 2147483648, %v888_v54  ;;  %675 = vpow2.f32 %v609_v29  ;;  %v947_v45 = vadd.f32 %v780_v18, %v189_v36 }
  0xbe   :  { %536 = vst [vmem:[%s1089_s4 + $0x8] sm:$0xff] %v520_v40  ;;  %v524_v37 = vmul.f32 %v367_v47, %v806_v38  ;;  %v417_v48 = vmul.f32 %v670_v26, %v416_v42  ;;  %vm420_vm11 = vweird.f32 %v670_v26  ;;  %v953_v49 = vadd.f32 1.0, %v672_v46 }
  0xbf   :  { %v613_v50 = vmul.f32 -1.442695, %v947_v45  ;;  %v957_v51 = vadd.f32 %v780_v18, %v193_v34  ;;  %v960_v52 = vadd.f32 %v780_v18, %v182_v39  ;;  %v186_v53 = vmul.f32 %v775_v17, %v152_v44 }
  0xc0   :  { %540 = vst [vmem:[%s1089_s4 + $0x28] sm:$0xff] %v524_v37  ;;  %v418_v23 = vadd.f32 %v670_v26, %v417_v48  ;;  %vm419_vm12 = vweird.f32 %v888_v54  ;;  %677 = vrcp.f32 %v953_v49  ;;  %v426_v56 = vor.u32 1.1754944e-38, %v425_v21 }
  0xc1   :  { %v674_v38 = vpop.eup %673  ;;  %vm421_vm13 = vmor %vm419_vm12, %vm420_vm11  ;;  %679 = vpow2.f32 %v613_v50  ;;  %v617_v24 = vmul.f32 -1.442695, %v957_v51  ;;  %v606_v57 = vmul.f32 -1.442695, %v960_v52  ;;  %vm424_vm14 = vcmp.eq.f32.partialorder %v423_v43, 8.507059e+37 }
  0xc2   :  { %v422_v59 = vsel %vm421_vm13, %v670_v26, %v418_v23  ;;  %v475_v60 = vmul.f32 %v674_v38, %v918_v15  ;;  %v483_v61 = vand.u32 2147483647, %v918_v15  ;;  %v485_v54 = vand.u32 2147483648, %v918_v15 }
  0xc3   :  { %v676_v0 = vpop.eup %675  ;;  %v427_v1 = vsel %vm424_vm14, %v426_v56, %v422_v59  ;;  %681 = vpow2.f32 %v617_v24  ;;  %v974_v2 = vadd.f32 %v780_v18, %v186_v53  ;;  %v194_v7 = vmul.f32 %v775_v17, %v172_v63 }
  0xc4   :  { %v528_v4 = vmul.f32 %v427_v1, %v818_v55  ;;  %v476_v58 = vsub.f32 1.0, %v475_v60  ;;  %v977_v5 = vadd.f32 1.0, %v676_v0  ;;  %683 = vpow2.f32 %v606_v57 }
  0xc5   :  { %v610_v6 = vmul.f32 -1.442695, %v974_v2  ;;  %vm480_vm15 = vweird.f32 %v674_v38  ;;  %v190_v10 = vmul.f32 %v775_v17, %v162_v3  ;;  %vm479_vm0 = vweird.f32 %v918_v15 }
  0xc6   :  { %v678_v8 = vpop.eup %677  ;;  %544 = vst [vmem:[%s1089_s4 + $0x48] sm:$0xff] %v528_v4  ;;  %v477_v9 = vmul.f32 %v674_v38, %v476_v58  ;;  %685 = vrcp.f32 %v977_v5  ;;  %vm987_vm1 = vcmp.eq.f32.partialorder %v483_v61, 8.507059e+37  ;;  %v486_v14 = vor.u32 1.1754944e-38, %v485_v54  ;;  %vm481_vm3 = vmor %vm479_vm0, %vm480_vm15 }
  0xc7   :  { %v680_v55 = vpop.eup %679  ;;  %v310_v13 = vmul.f32 %v678_v8, %v953_v49  ;;  %vm314_vm2 = vweird.f32 %v953_v49  ;;  %v318_v17 = vand.u32 2147483647, %v953_v49  ;;  %687 = vpow2.f32 %v610_v6 }
  0xc8   :  { %v478_v62 = vadd.f32 %v674_v38, %v477_v9  ;;  %v993_v35 = vadd.f32 1.0, %v680_v55  ;;  %v997_v15 = vadd.f32 %v780_v18, %v194_v7  ;;  %v320_v28 = vand.u32 2147483648, %v953_v49 }
  0xc9   :  { %v682_v19 = vpop.eup %681  ;;  %v311_v22 = vsub.f32 1.0, %v310_v13  ;;  %v1002_v29 = vadd.f32 %v780_v18, %v190_v10  ;;  %vm315_vm4 = vweird.f32 %v678_v8  ;;  %vm319_vm5 = vcmp.eq.f32.partialorder %v318_v17, 8.507059e+37 }
  0xca   :  { %v684_v26 = vpop.eup %683  ;;  %v482_v27 = vsel %vm481_vm3, %v674_v38, %v478_v62  ;;  %689 = vrcp.f32 %v993_v35  ;;  %v1006_v31 = vadd.f32 1.0, %v682_v19  ;;  %vm316_vm6 = vmor %vm314_vm2, %vm315_vm4  ;;  %v321_v18 = vor.u32 1.1754944e-38, %v320_v28 }
  0xcb   :  { %v487_v36 = vsel %vm987_vm1, %v486_v14, %v482_v27  ;;  %v312_v30 = vmul.f32 %v678_v8, %v311_v22  ;;  %v1009_v20 = vadd.f32 1.0, %v684_v26  ;;  %v378_v40 = vand.u32 2147483647, %v977_v5 }
  0xcc   :  { %v686_v32 = vpop.eup %685  ;;  %v532_v33 = vmul.f32 %v487_v36, %v842_v12  ;;  %691 = vrcp.f32 %v1006_v31  ;;  %v614_v12 = vmul.f32 -1.442695, %v1002_v29  ;;  %v380_v44 = vand.u32 2147483648, %v977_v5 }
  0xcd   :  { %v313_v34 = vadd.f32 %v678_v8, %v312_v30  ;;  %v370_v39 = vmul.f32 %v686_v32, %v977_v5  ;;  %v688_v41 = vpop.eup %687  ;;  %693 = vrcp.f32 %v1009_v20  ;;  %vm374_vm7 = vweird.f32 %v977_v5 }
  0xce   :  { %548 = vst [vmem:[%s1089_s4 + $0x68] sm:$0xff] %v532_v33  ;;  %v438_v21 = vand.u32 2147483647, %v993_v35  ;;  %vm375_vm8 = vweird.f32 %v686_v32  ;;  %v440_v50 = vand.u32 2147483648, %v993_v35  ;;  %v1027_v53 = vadd.f32 1.0, %v688_v41 }
  0xcf   :  { %v317_v42 = vsel %vm316_vm6, %v678_v8, %v313_v34  ;;  %v371_v43 = vsub.f32 1.0, %v370_v39  ;;  %695 = vpow2.f32 %v614_v12  ;;  %vm379_vm9 = vcmp.eq.f32.partialorder %v378_v40, 8.507059e+37  ;;  %vm376_vm10 = vmor %vm374_vm7, %vm375_vm8 }
  0xd0   :  { %v690_v46 = vpop.eup %689  ;;  %v322_v47 = vsel %vm319_vm5, %v321_v18, %v317_v42  ;;  %v381_v38 = vor.u32 1.1754944e-38, %v380_v44  ;;  %vm434_vm11 = vweird.f32 %v993_v35  ;;  %vm1035_vm12 = vcmp.eq.f32.partialorder %v438_v21, 8.507059e+37 }
  0xd1   :  { %v521_v37 = vmul.f32 %v322_v47, %v847_v16  ;;  %v372_v48 = vmul.f32 %v686_v32, %v371_v43  ;;  %v430_v49 = vmul.f32 %v690_v46, %v993_v35  ;;  %697 = vrcp.f32 %v1027_v53 }
  0xd2   :  { %v692_v24 = vpop.eup %691  ;;  %v618_v57 = vmul.f32 -1.442695, %v997_v15  ;;  %vm435_vm13 = vweird.f32 %v690_v46  ;;  %v441_v1 = vor.u32 1.1754944e-38, %v440_v50  ;;  %v498_v54 = vand.u32 2147483647, %v1006_v31 }
  0xd3   :  { %537 = vst [vmem:[%s1089_s4 + $0x10] sm:$0xff] %v521_v37  ;;  %v373_v23 = vadd.f32 %v686_v32, %v372_v48  ;;  %v431_v56 = vsub.f32 1.0, %v430_v49  ;;  %v694_v59 = vpop.eup %693  ;;  %v490_v63 = vmul.f32 %v692_v24, %v1006_v31  ;;  %v500_v6 = vand.u32 2147483648, %v1006_v31  ;;  %vm436_vm14 = vmor %vm434_vm11, %vm435_vm13 }
  0xd4   :  { %v325_v3 = vmul.f32 %v694_v59, %v1009_v20  ;;  %v333_v9 = vand.u32 2147483647, %v1009_v20  ;;  %v335_v10 = vand.u32 2147483648, %v1009_v20  ;;  %699 = vpow2.f32 %v618_v57 }
  0xd5   :  { %v377_v60 = vsel %vm376_vm10, %v686_v32, %v373_v23  ;;  %v432_v61 = vmul.f32 %v690_v46, %v431_v56  ;;  %v491_v5 = vsub.f32 1.0, %v490_v63  ;;  %v696_v7 = vpop.eup %695  ;;  %vm495_vm15 = vweird.f32 %v692_v24 }
  0xd6   :  { %v382_v0 = vsel %vm379_vm9, %v381_v38, %v377_v60  ;;  %v326_v8 = vsub.f32 1.0, %v325_v3  ;;  %v274_v11 = vadd.f32 1.0, %v696_v7  ;;  %vm494_vm0 = vweird.f32 %v1006_v31 }
  0xd7   :  { %v525_v4 = vmul.f32 %v382_v0, %v854_v25  ;;  %v433_v58 = vadd.f32 %v690_v46, %v432_v61  ;;  %v492_v25 = vmul.f32 %v692_v24, %v491_v5  ;;  %v698_v13 = vpop.eup %697  ;;  %vm330_vm1 = vweird.f32 %v694_v59  ;;  %vm496_vm3 = vmor %vm494_vm0, %vm495_vm15 }
  0xd8   :  { %v327_v14 = vmul.f32 %v694_v59, %v326_v8  ;;  %vm329_vm2 = vweird.f32 %v1009_v20  ;;  %v385_v22 = vmul.f32 %v698_v13, %v1027_v53  ;;  %vm499_vm4 = vcmp.eq.f32.partialorder %v498_v54, 8.507059e+37 }
  0xd9   :  { %541 = vst [vmem:[%s1089_s4 + $0x30] sm:$0xff] %v525_v4  ;;  %v437_v55 = vsel %vm436_vm14, %v690_v46, %v433_v58  ;;  %v493_v19 = vadd.f32 %v692_v24, %v492_v25  ;;  %v501_v17 = vor.u32 1.1754944e-38, %v500_v6  ;;  %701 = vrcp.f32 %v274_v11  ;;  %vm331_vm5 = vmor %vm329_vm2, %vm330_vm1 }
  0xda   :  { %v442_v62 = vsel %vm1035_vm12, %v441_v1, %v437_v55  ;;  %v328_v26 = vadd.f32 %v694_v59, %v327_v14  ;;  %vm334_vm6 = vcmp.eq.f32.partialorder %v333_v9, 8.507059e+37  ;;  %v336_v28 = vor.u32 1.1754944e-38, %v335_v10 }
  0xdb   :  { %v529_v35 = vmul.f32 %v442_v62, %v947_v45  ;;  %v497_v27 = vsel %vm496_vm3, %v692_v24, %v493_v19  ;;  %v386_v36 = vsub.f32 1.0, %v385_v22  ;;  %v700_v45 = vpop.eup %699  ;;  %v393_v32 = vand.u32 2147483647, %v1027_v53 }
  0xdc   :  { %v502_v30 = vsel %vm499_vm4, %v501_v17, %v497_v27  ;;  %v332_v31 = vsel %vm331_vm5, %v694_v59, %v328_v26  ;;  %v395_v33 = vand.u32 2147483648, %v1027_v53  ;;  %vm390_vm7 = vweird.f32 %v698_v13 }
  0xdd   :  { %545 = vst [vmem:[%s1089_s4 + $0x50] sm:$0xff] %v529_v35  ;;  %v533_v20 = vmul.f32 %v502_v30, %v957_v51  ;;  %v337_v34 = vsel %vm334_vm6, %v336_v28, %v332_v31  ;;  %v387_v39 = vmul.f32 %v698_v13, %v386_v36  ;;  %v278_v40 = vadd.f32 1.0, %v700_v45 }
  0xde   :  { %v522_v18 = vmul.f32 %v337_v34, %v960_v52  ;;  %vm389_vm8 = vweird.f32 %v1027_v53  ;;  %v396_v51 = vor.u32 1.1754944e-38, %v395_v33  ;;  %vm394_vm10 = vcmp.eq.f32.partialorder %v393_v32, 8.507059e+37 }
  0xdf   :  { %549 = vst [vmem:[%s1089_s4 + $0x70] sm:$0xff] %v533_v20  ;;  %v388_v12 = vadd.f32 %v698_v13, %v387_v39  ;;  %v702_v41 = vpop.eup %701  ;;  %vm391_vm9 = vmor %vm389_vm8, %vm390_vm7  ;;  %703 = vrcp.f32 %v278_v40  ;;  %v455_v47 = vand.u32 2147483648, %v274_v11  ;;  %v453_v37 = vand.u32 2147483647, %v274_v11 }
  0xe0   :  { %538 = vst [vmem:[%s1089_s4 + $0x18] sm:$0xff] %v522_v18  ;;  %v445_v43 = vmul.f32 %v702_v41, %v274_v11  ;;  %vm450_vm11 = vweird.f32 %v702_v41  ;;  %vm449_vm12 = vweird.f32 %v274_v11  ;;  %v513_v57 = vand.u32 2147483647, %v278_v40 }
  0xe1   :  { %v392_v42 = vsel %vm391_vm9, %v698_v13, %v388_v12  ;;  %vm451_vm13 = vmor %vm449_vm12, %vm450_vm11  ;;  %v456_v53 = vor.u32 1.1754944e-38, %v455_v47  ;;  %vm454_vm14 = vcmp.eq.f32.partialorder %v453_v37, 8.507059e+37  ;;  %vm509_vm0 = vweird.f32 %v278_v40 }
  0xe2   :  { %v397_v52 = vsel %vm394_vm10, %v396_v51, %v392_v42  ;;  %v446_v46 = vsub.f32 1.0, %v445_v43  ;;  %vm514_vm2 = vcmp.eq.f32.partialorder %v513_v57, 8.507059e+37 }
  0xe3   :  { %v526_v44 = vmul.f32 %v397_v52, %v974_v2  ;;  %v515_v2 = vand.u32 2147483648, %v278_v40 }
  0xe4   :  { %v447_v21 = vmul.f32 %v702_v41, %v446_v46 }
  0xe5   :  { %542 = vst [vmem:[%s1089_s4 + $0x38] sm:$0xff] %v526_v44  ;;  %v704_v48 = vpop.eup %703  ;;  %v516_v60 = vor.u32 1.1754944e-38, %v515_v2 }
  0xe6   :  { %v448_v49 = vadd.f32 %v702_v41, %v447_v21  ;;  %v505_v50 = vmul.f32 %v704_v48, %v278_v40  ;;  %vm510_vm15 = vweird.f32 %v704_v48 }
  0xe7   :  { %vm511_vm1 = vmor %vm509_vm0, %vm510_vm15 }
  0xe8   :  { %v452_v23 = vsel %vm451_vm13, %v702_v41, %v448_v49  ;;  %v506_v38 = vsub.f32 1.0, %v505_v50 }
  0xe9   :  { %v457_v56 = vsel %vm454_vm14, %v456_v53, %v452_v23 }
  0xea   :  { %v530_v24 = vmul.f32 %v457_v56, %v1002_v29  ;;  %v507_v16 = vmul.f32 %v704_v48, %v506_v38 }
  0xec   :  { %546 = vst [vmem:[%s1089_s4 + $0x58] sm:$0xff] %v530_v24  ;;  %v508_v59 = vadd.f32 %v704_v48, %v507_v16 }
  0xee   :  { %v512_v61 = vsel %vm511_vm1, %v704_v48, %v508_v59 }
  0xef   :  { %v517_v63 = vsel %vm514_vm2, %v516_v60, %v512_v61 }
  0xf0   :  { %v534_v0 = vmul.f32 %v517_v63, %v997_v15 }
  0xf2   :  { %550 = vst [vmem:[%s1089_s4 + $0x78] sm:$0xff] %v534_v0 }

// kernel: csp_rep_layer.18
= control target key start
LH: loop header
LB: loop body
LE: loop exit
PB: predicated region body
PF: predicated region fallthrough
CT: control target
= control target key end

     0   :  { %vm119_vm0 = vcmask 1040384   ;;  %vm120_vm1 = vcmask 1041408   ;;  %v305_v1 = vmov 65535   ;;  %vm94_vm2 = vcmask 285696   ;;  %s444_s1 = inlined_call_operand.vmem [shape: bf16[35,128], index: 1, kind: input, shape index: {}]   ;;  %s445_s2 = inlined_call_operand.vmem [shape: f32[1,128], index: 2, kind: input, shape index: {}]   ;;  %s446_s3 = inlined_call_operand.vmem [shape: f32[1,128], index: 3, kind: input, shape index: {}]   ;;  %s447_s0 = inlined_call_operand.vmem [shape: bf16[128,35], index: 0, kind: input, shape index: {}]   ;;  %s448_s4 = inlined_call_operand.vmem [shape: f32[128,128], index: 4, kind: output, shape index: {}]  }
   0x1   :  { %v38_v0 = vld [vmem:[%s444_s1 + $0x10] sm:$0x3]  ;;  %v121_v2 = vsel %vm119_vm0, 4294967295, %v305_v1  ;;  %v292_v7 = vld [vmem:[%s444_s1 + $0x8] sm:$0xff]  ;;  %v291_v8 = vld [vmem:[%s444_s1] sm:$0xff] }
   0x2   :  { %v88_v3 = vunpack.c.l.b16 %v38_v0  ;;  %v122_v4 = vsel %vm120_vm1, %v121_v2, 0  ;;  %v283_v9 = vld [vmem:[%s447_s0] sm:$0xff]  ;;  %v285_v10 = vld [vmem:[%s447_s0 + $0x10] sm:$0xff]  ;;  %v284_v13 = vld [vmem:[%s447_s0 + $0x8] sm:$0xff] }
   0x3   :  { %v287_v11 = vld [vmem:[%s447_s0 + $0x20] sm:$0xff]  ;;  %v289_v12 = vld [vmem:[%s447_s0 + $0x30] sm:$0xff]  ;;  %v286_v14 = vld [vmem:[%s447_s0 + $0x18] sm:$0xff] }
   0x4   :  { %v91_v5 = vpack.c.b16 %v88_v3, %v88_v3  ;;  %v288_v15 = vld [vmem:[%s447_s0 + $0x28] sm:$0xff]  ;;  %v290_v16 = vld [vmem:[%s447_s0 + $0x38] sm:$0xff]  ;;  %v303_v17 = vld [vmem:[%s445_s2] ss:$0 sm:$0xff] }
   0x5   :  { %v378_v18 = vld [vmem:[%s446_s3] ss:$0 sm:$0xff] }
   0x6   :  { %v124_v6 = vand.u32 %v122_v4, %v91_v5 }
   0x8   :  { %131 = vmatpush.bf16.msra.mxu0 %v124_v6  ;;  %293 = vmatpush.bf16.msra.mxu1 %v124_v6 }
   0x9   :  { %294 = vmatpush.bf16.msra.mxu2 %v124_v6  ;;  %295 = vmatpush.bf16.msra.mxu3 %v124_v6 }
   0xc   :  { %132 = vmatpush.bf16.msra.mxu0 %v292_v7  ;;  %296 = vmatpush.bf16.msra.mxu1 %v292_v7 }
   0xd   :  { %297 = vmatpush.bf16.msra.mxu2 %v292_v7  ;;  %298 = vmatpush.bf16.msra.mxu3 %v292_v7 }
  0x10   :  { %133 = vmatpush.bf16.msra.mxu0 %v291_v8  ;;  %299 = vmatpush.bf16.msra.mxu1 %v291_v8 }
  0x11   :  { %300 = vmatpush.bf16.msra.mxu2 %v291_v8  ;;  %301 = vmatpush.bf16.msra.mxu3 %v291_v8 }
  0x13   :  { %275 = vmatmul.msk.bf16.vlgmr.msra.gmra.mxu0 %vm94_vm2, %v283_v9  ;;  %277 = vmatmul.msk.bf16.vlgmr.msra.gmra.mxu1 %vm94_vm2, %v285_v10 }
  0x14   :  { %279 = vmatmul.msk.bf16.vlgmr.msra.gmra.mxu2 %vm94_vm2, %v287_v11  ;;  %281 = vmatmul.msk.bf16.vlgmr.msra.gmra.mxu3 %vm94_vm2, %v289_v12 }
  0x23   :  { %276 = vmatmul.msk.bf16.gmra.mxu0 %vm94_vm2, %v284_v13  ;;  %278 = vmatmul.msk.bf16.gmra.mxu1 %vm94_vm2, %v286_v14 }
  0x24   :  { %280 = vmatmul.msk.bf16.gmra.mxu2 %vm94_vm2, %v288_v15  ;;  %282 = vmatmul.msk.bf16.gmra.mxu3 %vm94_vm2, %v290_v16 }
  0x90   :  { %v135_v19 = vpop.f32.mrf.mxu0  ;;  %v145_v20 = vpop.f32.mrf.mxu1 }
  0x91   :  { %v179_v21 = vmul.f32 %v303_v17, %v135_v19  ;;  %v183_v22 = vmul.f32 %v303_v17, %v145_v20 }
  0x93   :  { %v199_v23 = vadd.f32 %v378_v18, %v179_v21  ;;  %v203_v24 = vadd.f32 %v378_v18, %v183_v22 }
  0x95   :  { %215 = vst [vmem:[%s448_s4] sm:$0xff] %v199_v23 }
  0x96   :  { %219 = vst [vmem:[%s448_s4 + $0x20] sm:$0xff] %v203_v24 }
  0x97   :  { %v155_v25 = vpop.f32.mrf.mxu2  ;;  %v165_v26 = vpop.f32.mrf.mxu3 }
  0x98   :  { %v187_v27 = vmul.f32 %v303_v17, %v155_v25  ;;  %v191_v28 = vmul.f32 %v303_v17, %v165_v26  ;;  %v137_v29 = vpop.f32.mrf.mxu0  ;;  %v147_v30 = vpop.f32.mrf.mxu1 }
  0x99   :  { %v180_v31 = vmul.f32 %v303_v17, %v137_v29  ;;  %v184_v32 = vmul.f32 %v303_v17, %v147_v30 }
  0x9a   :  { %v207_v33 = vadd.f32 %v378_v18, %v187_v27  ;;  %v211_v34 = vadd.f32 %v378_v18, %v191_v28 }
  0x9b   :  { %v200_v35 = vadd.f32 %v378_v18, %v180_v31  ;;  %v204_v36 = vadd.f32 %v378_v18, %v184_v32 }
  0x9c   :  { %223 = vst [vmem:[%s448_s4 + $0x40] sm:$0xff] %v207_v33 }
  0x9d   :  { %227 = vst [vmem:[%s448_s4 + $0x60] sm:$0xff] %v211_v34 }
  0x9e   :  { %216 = vst [vmem:[%s448_s4 + $0x8] sm:$0xff] %v200_v35 }
  0x9f   :  { %220 = vst [vmem:[%s448_s4 + $0x28] sm:$0xff] %v204_v36  ;;  %v157_v37 = vpop.f32.mrf.mxu2  ;;  %v167_v38 = vpop.f32.mrf.mxu3 }
  0xa0   :  { %v188_v39 = vmul.f32 %v303_v17, %v157_v37  ;;  %v192_v40 = vmul.f32 %v303_v17, %v167_v38  ;;  %v140_v41 = vpop.f32.mrf.mxu0  ;;  %v150_v42 = vpop.f32.mrf.mxu1 }
  0xa1   :  { %v181_v43 = vmul.f32 %v303_v17, %v140_v41  ;;  %v185_v44 = vmul.f32 %v303_v17, %v150_v42 }
  0xa2   :  { %v208_v45 = vadd.f32 %v378_v18, %v188_v39  ;;  %v212_v46 = vadd.f32 %v378_v18, %v192_v40 }
  0xa3   :  { %v201_v47 = vadd.f32 %v378_v18, %v181_v43  ;;  %v205_v48 = vadd.f32 %v378_v18, %v185_v44 }
  0xa4   :  { %224 = vst [vmem:[%s448_s4 + $0x48] sm:$0xff] %v208_v45 }
  0xa5   :  { %228 = vst [vmem:[%s448_s4 + $0x68] sm:$0xff] %v212_v46 }
  0xa6   :  { %217 = vst [vmem:[%s448_s4 + $0x10] sm:$0xff] %v201_v47 }
  0xa7   :  { %221 = vst [vmem:[%s448_s4 + $0x30] sm:$0xff] %v205_v48  ;;  %v160_v49 = vpop.f32.mrf.mxu2  ;;  %v170_v50 = vpop.f32.mrf.mxu3 }
  0xa8   :  { %v189_v51 = vmul.f32 %v303_v17, %v160_v49  ;;  %v193_v52 = vmul.f32 %v303_v17, %v170_v50  ;;  %v142_v53 = vpop.f32.mrf.mxu0  ;;  %v152_v54 = vpop.f32.mrf.mxu1 }
  0xa9   :  { %v182_v55 = vmul.f32 %v303_v17, %v142_v53  ;;  %v186_v56 = vmul.f32 %v303_v17, %v152_v54 }
  0xaa   :  { %v209_v57 = vadd.f32 %v378_v18, %v189_v51  ;;  %v213_v58 = vadd.f32 %v378_v18, %v193_v52 }
  0xab   :  { %v202_v59 = vadd.f32 %v378_v18, %v182_v55  ;;  %v206_v60 = vadd.f32 %v378_v18, %v186_v56 }
  0xac   :  { %225 = vst [vmem:[%s448_s4 + $0x50] sm:$0xff] %v209_v57 }
  0xad   :  { %229 = vst [vmem:[%s448_s4 + $0x70] sm:$0xff] %v213_v58 }
  0xae   :  { %218 = vst [vmem:[%s448_s4 + $0x18] sm:$0xff] %v202_v59 }
  0xaf   :  { %222 = vst [vmem:[%s448_s4 + $0x38] sm:$0xff] %v206_v60  ;;  %v162_v61 = vpop.f32.mrf.mxu2  ;;  %v172_v62 = vpop.f32.mrf.mxu3 }
  0xb0   :  { %v190_v63 = vmul.f32 %v303_v17, %v162_v61  ;;  %v194_v0 = vmul.f32 %v303_v17, %v172_v62 }
  0xb2   :  { %v210_v1 = vadd.f32 %v378_v18, %v190_v63  ;;  %v214_v2 = vadd.f32 %v378_v18, %v194_v0 }
  0xb4   :  { %226 = vst [vmem:[%s448_s4 + $0x58] sm:$0xff] %v210_v1 }
  0xb5   :  { %230 = vst [vmem:[%s448_s4 + $0x78] sm:$0xff] %v214_v2 }

// kernel: csp_rep_layer.27
= control target key start
LH: loop header
LB: loop body
LE: loop exit
PB: predicated region body
PF: predicated region fallthrough
CT: control target
= control target key end

     0   :  { %vm100_vm0 = vcmask 1042432   ;;  %vm101_vm1 = vcmask 1043456   ;;  %v670_v1 = vmov 65535   ;;  %vm75_vm2 = vcmask 56320   ;;  %s1044_s1 = inlined_call_operand.vmem [shape: bf16[7,128], index: 1, kind: input, shape index: {}]   ;;  %s1045_s0 = inlined_call_operand.vmem [shape: bf16[128,7], index: 0, kind: input, shape index: {}]   ;;  %s1046_s2 = inlined_call_operand.vmem [shape: f32[1,128], index: 2, kind: input, shape index: {}]   ;;  %s1047_s3 = inlined_call_operand.vmem [shape: f32[1,128], index: 3, kind: input, shape index: {}]   ;;  %s1048_s4 = inlined_call_operand.vmem [shape: f32[128,128], index: 4, kind: output, shape index: {}]  }
   0x1   :  { %v34_v0 = vld [vmem:[%s1044_s1] sm:$0xf]  ;;  %v102_v2 = vsel %vm100_vm0, 4294967295, %v670_v1  ;;  %v594_v6 = vld [vmem:[%s1045_s0 + $0x10] sm:$0xff]  ;;  %v593_v9 = vld [vmem:[%s1045_s0 + $0x8] sm:$0xff] }
   0x2   :  { %v103_v3 = vsel %vm101_vm1, %v102_v2, 0  ;;  %v592_v5 = vld [vmem:[%s1045_s0] sm:$0xff]  ;;  %v598_v8 = vld [vmem:[%s1045_s0 + $0x30] sm:$0xff]  ;;  %v595_v10 = vld [vmem:[%s1045_s0 + $0x18] sm:$0xff] }
   0x3   :  { %v105_v4 = vand.u32 %v103_v3, %v34_v0  ;;  %v596_v7 = vld [vmem:[%s1045_s0 + $0x20] sm:$0xff]  ;;  %v597_v11 = vld [vmem:[%s1045_s0 + $0x28] sm:$0xff]  ;;  %v599_v12 = vld [vmem:[%s1045_s0 + $0x38] sm:$0xff] }
   0x4   :  { %v734_v13 = vld [vmem:[%s1046_s2] ss:$0 sm:$0xff] }
   0x5   :  { %114 = vmatpush.bf16.msra.mxu0 %v105_v4  ;;  %600 = vmatpush.bf16.msra.mxu1 %v105_v4  ;;  %v739_v14 = vld [vmem:[%s1047_s3] ss:$0 sm:$0xff] }
   0x6   :  { %601 = vmatpush.bf16.msra.mxu2 %v105_v4  ;;  %602 = vmatpush.bf16.msra.mxu3 %v105_v4 }
   0x8   :  { %568 = vmatmul.msk.bf16.vlgmr.msra.gmra.mxu0 %vm75_vm2, %v592_v5  ;;  %570 = vmatmul.msk.bf16.vlgmr.msra.gmra.mxu1 %vm75_vm2, %v594_v6 }
   0x9   :  { %572 = vmatmul.msk.bf16.vlgmr.msra.gmra.mxu2 %vm75_vm2, %v596_v7  ;;  %574 = vmatmul.msk.bf16.vlgmr.msra.gmra.mxu3 %vm75_vm2, %v598_v8 }
  0x18   :  { %569 = vmatmul.msk.bf16.gmra.mxu0 %vm75_vm2, %v593_v9  ;;  %571 = vmatmul.msk.bf16.gmra.mxu1 %vm75_vm2, %v595_v10 }
  0x19   :  { %573 = vmatmul.msk.bf16.gmra.mxu2 %vm75_vm2, %v597_v11  ;;  %575 = vmatmul.msk.bf16.gmra.mxu3 %vm75_vm2, %v599_v12 }
  0x85   :  { %v116_v15 = vpop.f32.mrf.mxu0  ;;  %v126_v16 = vpop.f32.mrf.mxu1 }
  0x86   :  { %v160_v17 = vmul.f32 %v734_v13, %v116_v15  ;;  %v164_v18 = vmul.f32 %v734_v13, %v126_v16 }
  0x88   :  { %v744_v19 = vadd.f32 %v739_v14, %v160_v17  ;;  %v747_v20 = vadd.f32 %v739_v14, %v164_v18 }
  0x8a   :  { %v576_v21 = vmul.f32 -1.442695, %v744_v19  ;;  %v580_v22 = vmul.f32 -1.442695, %v747_v20 }
  0x8c   :  { %606 = vpow2.f32 %v576_v21  ;;  %v136_v23 = vpop.f32.mrf.mxu2  ;;  %v146_v24 = vpop.f32.mrf.mxu3 }
  0x8d   :  { %608 = vpow2.f32 %v580_v22  ;;  %v168_v25 = vmul.f32 %v734_v13, %v136_v23  ;;  %v172_v26 = vmul.f32 %v734_v13, %v146_v24  ;;  %v118_v27 = vpop.f32.mrf.mxu0  ;;  %v128_v28 = vpop.f32.mrf.mxu1 }
  0x8e   :  { %v161_v29 = vmul.f32 %v734_v13, %v118_v27  ;;  %v165_v30 = vmul.f32 %v734_v13, %v128_v28 }
  0x8f   :  { %v756_v31 = vadd.f32 %v739_v14, %v168_v25  ;;  %v759_v32 = vadd.f32 %v739_v14, %v172_v26 }
  0x90   :  { %v762_v33 = vadd.f32 %v739_v14, %v161_v29  ;;  %v765_v34 = vadd.f32 %v739_v14, %v165_v30 }
  0x91   :  { %v584_v35 = vmul.f32 -1.442695, %v756_v31  ;;  %v588_v36 = vmul.f32 -1.442695, %v759_v32 }
  0x92   :  { %v607_v37 = vpop.eup %606  ;;  %v577_v40 = vmul.f32 -1.442695, %v762_v33  ;;  %v581_v42 = vmul.f32 -1.442695, %v765_v34 }
  0x93   :  { %v609_v38 = vpop.eup %608  ;;  %v244_v39 = vadd.f32 1.0, %v607_v37  ;;  %610 = vpow2.f32 %v584_v35 }
  0x94   :  { %v770_v41 = vadd.f32 1.0, %v609_v38  ;;  %612 = vpow2.f32 %v588_v36  ;;  %v138_v43 = vpop.f32.mrf.mxu2  ;;  %v148_v45 = vpop.f32.mrf.mxu3 }
  0x95   :  { %614 = vrcp.f32 %v244_v39  ;;  %v169_v44 = vmul.f32 %v734_v13, %v138_v43  ;;  %v269_v46 = vand.u32 2147483647, %v244_v39  ;;  %v271_v47 = vand.u32 2147483648, %v244_v39  ;;  %v121_v48 = vpop.f32.mrf.mxu0  ;;  %v131_v56 = vpop.f32.mrf.mxu1 }
  0x96   :  { %616 = vrcp.f32 %v770_v41  ;;  %v329_v50 = vand.u32 2147483647, %v770_v41  ;;  %v331_v53 = vand.u32 2147483648, %v770_v41  ;;  %v173_v55 = vmul.f32 %v734_v13, %v148_v45 }
  0x97   :  { %618 = vpow2.f32 %v577_v40  ;;  %v777_v51 = vadd.f32 %v739_v14, %v169_v44  ;;  %vm265_vm3 = vweird.f32 %v244_v39  ;;  %vm325_vm4 = vweird.f32 %v770_v41 }
  0x98   :  { %620 = vpow2.f32 %v581_v42  ;;  %v162_v59 = vmul.f32 %v734_v13, %v121_v48  ;;  %vm787_vm5 = vcmp.eq.f32.partialorder %v269_v46, 8.507059e+37  ;;  %v272_v63 = vor.u32 1.1754944e-38, %v271_v47 }
  0x99   :  { %v611_v49 = vpop.eup %610  ;;  %vm793_vm6 = vcmp.eq.f32.partialorder %v329_v50, 8.507059e+37  ;;  %v585_v3 = vmul.f32 -1.442695, %v777_v51  ;;  %v166_v4 = vmul.f32 %v734_v13, %v131_v56  ;;  %v332_v7 = vor.u32 1.1754944e-38, %v331_v53 }
  0x9a   :  { %v613_v52 = vpop.eup %612  ;;  %v780_v54 = vadd.f32 1.0, %v611_v49  ;;  %v801_v8 = vadd.f32 %v739_v14, %v173_v55  ;;  %v806_v12 = vadd.f32 %v739_v14, %v162_v59 }
  0x9b   :  { %v615_v57 = vpop.eup %614  ;;  %v784_v58 = vadd.f32 1.0, %v613_v52  ;;  %v813_v21 = vadd.f32 %v739_v14, %v166_v4 }
  0x9c   :  { %v617_v60 = vpop.eup %616  ;;  %v261_v61 = vmul.f32 %v615_v57, %v244_v39  ;;  %622 = vrcp.f32 %v780_v54  ;;  %v389_v10 = vand.u32 2147483647, %v780_v54  ;;  %v391_v11 = vand.u32 2147483648, %v780_v54 }
  0x9d   :  { %v619_v0 = vpop.eup %618  ;;  %v321_v1 = vmul.f32 %v617_v60, %v770_v41  ;;  %624 = vrcp.f32 %v784_v58  ;;  %vm266_vm7 = vweird.f32 %v615_v57  ;;  %vm326_vm8 = vweird.f32 %v617_v60 }
  0x9e   :  { %v621_v5 = vpop.eup %620  ;;  %v262_v6 = vsub.f32 1.0, %v261_v61  ;;  %v808_v16 = vadd.f32 1.0, %v619_v0  ;;  %626 = vpow2.f32 %v585_v3  ;;  %vm385_vm9 = vweird.f32 %v780_v54  ;;  %vm267_vm10 = vmor %vm265_vm3, %vm266_vm7 }
  0x9f   :  { %v322_v9 = vsub.f32 1.0, %v321_v1  ;;  %v810_v17 = vadd.f32 1.0, %v621_v5  ;;  %v449_v24 = vand.u32 2147483647, %v784_v58  ;;  %vm820_vm11 = vcmp.eq.f32.partialorder %v389_v10, 8.507059e+37  ;;  %vm327_vm13 = vmor %vm325_vm4, %vm326_vm8 }
  0xa0   :  { %v263_v15 = vmul.f32 %v615_v57, %v262_v6  ;;  %628 = vrcp.f32 %v808_v16  ;;  %v392_v28 = vor.u32 1.1754944e-38, %v391_v11  ;;  %vm445_vm12 = vweird.f32 %v784_v58  ;;  %v141_v6 = vpop.f32.mrf.mxu2 }
  0xa1   :  { %v323_v18 = vmul.f32 %v617_v60, %v322_v9  ;;  %v451_v35 = vand.u32 2147483648, %v784_v58  ;;  %630 = vrcp.f32 %v810_v17  ;;  %v589_v36 = vmul.f32 -1.442695, %v801_v8 }
  0xa2   :  { %v623_v22 = vpop.eup %622  ;;  %v264_v23 = vadd.f32 %v615_v57, %v263_v15  ;;  %vm837_vm14 = vcmp.eq.f32.partialorder %v449_v24, 8.507059e+37  ;;  %v284_v44 = vand.u32 2147483647, %v808_v16  ;;  %vm280_vm0 = vweird.f32 %v808_v16  ;;  %v151_v15 = vpop.f32.mrf.mxu3 }
  0xa3   :  { %v324_v25 = vadd.f32 %v617_v60, %v323_v18  ;;  %v381_v26 = vmul.f32 %v623_v22, %v780_v54  ;;  %v625_v29 = vpop.eup %624  ;;  %vm386_vm15 = vweird.f32 %v623_v22  ;;  %632 = vpow2.f32 %v589_v36  ;;  %v123_v18 = vpop.f32.mrf.mxu0 }
  0xa4   :  { %v268_v30 = vsel %vm267_vm10, %v615_v57, %v264_v23  ;;  %v441_v40 = vmul.f32 %v625_v29, %v784_v58  ;;  %v627_v45 = vpop.eup %626  ;;  %vm446_vm1 = vweird.f32 %v625_v29  ;;  %vm387_vm2 = vmor %vm385_vm9, %vm386_vm15  ;;  %vm855_vm3 = vcmp.eq.f32.partialorder %v284_v44, 8.507059e+37 }
  0xa5   :  { %v273_v37 = vsel %vm787_vm5, %v272_v63, %v268_v30  ;;  %v328_v38 = vsel %vm327_vm13, %v617_v60, %v324_v25  ;;  %v382_v39 = vsub.f32 1.0, %v381_v26  ;;  %v847_v50 = vadd.f32 1.0, %v627_v45  ;;  %vm447_vm4 = vmor %vm445_vm12, %vm446_vm1 }
  0xa6   :  { %v500_v42 = vmul.f32 %v273_v37, %v744_v19  ;;  %v333_v43 = vsel %vm793_vm6, %v332_v7, %v328_v38  ;;  %v442_v48 = vsub.f32 1.0, %v441_v40  ;;  %v629_v49 = vpop.eup %628  ;;  %v452_v19 = vor.u32 1.1754944e-38, %v451_v35  ;;  %v133_v40 = vpop.f32.mrf.mxu1 }
  0xa7   :  { %v504_v46 = vmul.f32 %v333_v43, %v747_v20  ;;  %v383_v47 = vmul.f32 %v623_v22, %v382_v39  ;;  %v276_v53 = vmul.f32 %v629_v49, %v808_v16  ;;  %v631_v55 = vpop.eup %630  ;;  %v286_v57 = vand.u32 2147483648, %v808_v16 }
  0xa8   :  { %516 = vst [vmem:[%s1048_s4] sm:$0xff] %v500_v42  ;;  %v443_v20 = vmul.f32 %v625_v29, %v442_v48  ;;  %634 = vrcp.f32 %v847_v50  ;;  %v578_v59 = vmul.f32 -1.442695, %v806_v12  ;;  %v336_v63 = vmul.f32 %v631_v55, %v810_v17 }
  0xa9   :  { %520 = vst [vmem:[%s1048_s4 + $0x20] sm:$0xff] %v504_v46  ;;  %v384_v52 = vadd.f32 %v623_v22, %v383_v47  ;;  %v277_v62 = vsub.f32 1.0, %v276_v53  ;;  %vm281_vm5 = vweird.f32 %v629_v49  ;;  %v344_v54 = vand.u32 2147483647, %v810_v17  ;;  %v633_v7 = vpop.eup %632 }
  0xaa   :  { %v444_v61 = vadd.f32 %v625_v29, %v443_v20  ;;  %v346_v1 = vand.u32 2147483648, %v810_v17  ;;  %v337_v5 = vsub.f32 1.0, %v336_v63  ;;  %vm340_vm6 = vweird.f32 %v810_v17  ;;  %vm282_vm8 = vmor %vm280_vm0, %vm281_vm5  ;;  %v143_v63 = vpop.f32.mrf.mxu2 }
  0xab   :  { %v388_v60 = vsel %vm387_vm2, %v623_v22, %v384_v52  ;;  %v278_v4 = vmul.f32 %v629_v49, %v277_v62  ;;  %vm341_vm7 = vweird.f32 %v631_v55  ;;  %636 = vpow2.f32 %v578_v59  ;;  %v153_v59 = vpop.f32.mrf.mxu3 }
  0xac   :  { %v393_v0 = vsel %vm820_vm11, %v392_v28, %v388_v60  ;;  %v448_v3 = vsel %vm447_vm4, %v625_v29, %v444_v61  ;;  %v877_v11 = vadd.f32 1.0, %v633_v7  ;;  %v287_v23 = vor.u32 1.1754944e-38, %v286_v57  ;;  %vm342_vm10 = vmor %vm340_vm6, %vm341_vm7 }
  0xad   :  { %v508_v2 = vmul.f32 %v393_v0, %v756_v31  ;;  %v453_v9 = vsel %vm837_vm14, %v452_v19, %v448_v3  ;;  %v279_v10 = vadd.f32 %v629_v49, %v278_v4  ;;  %v338_v31 = vmul.f32 %v631_v55, %v337_v5 }
  0xae   :  { %v512_v58 = vmul.f32 %v453_v9, %v759_v32  ;;  %v635_v22 = vpop.eup %634  ;;  %vm882_vm9 = vcmp.eq.f32.partialorder %v344_v54, 8.507059e+37  ;;  %v582_v25 = vmul.f32 -1.442695, %v813_v21  ;;  %v170_v32 = vmul.f32 %v734_v13, %v141_v6 }
  0xaf   :  { %524 = vst [vmem:[%s1048_s4 + $0x40] sm:$0xff] %v508_v2  ;;  %v283_v26 = vsel %vm282_vm8, %v629_v49, %v279_v10  ;;  %v339_v27 = vadd.f32 %v631_v55, %v338_v31  ;;  %v347_v28 = vor.u32 1.1754944e-38, %v346_v1  ;;  %v396_v29 = vmul.f32 %v635_v22, %v847_v50 }
  0xb0   :  { %528 = vst [vmem:[%s1048_s4 + $0x60] sm:$0xff] %v512_v58  ;;  %v288_v16 = vsel %vm855_vm3, %v287_v23, %v283_v26  ;;  %638 = vrcp.f32 %v877_v11  ;;  %v174_v30 = vmul.f32 %v734_v13, %v151_v15  ;;  %v163_v35 = vmul.f32 %v734_v13, %v123_v18 }
  0xb1   :  { %v501_v36 = vmul.f32 %v288_v16, %v762_v33  ;;  %v343_v37 = vsel %vm342_vm10, %v631_v55, %v339_v27  ;;  %v397_v38 = vsub.f32 1.0, %v396_v29  ;;  %v404_v39 = vand.u32 2147483647, %v847_v50  ;;  %v637_v42 = vpop.eup %636 }
  0xb2   :  { %v348_v43 = vsel %vm882_vm9, %v347_v28, %v343_v37  ;;  %v406_v17 = vand.u32 2147483648, %v847_v50  ;;  %640 = vpow2.f32 %v582_v25  ;;  %v906_v41 = vadd.f32 %v739_v14, %v170_v32 }
  0xb3   :  { %517 = vst [vmem:[%s1048_s4 + $0x8] sm:$0xff] %v501_v36  ;;  %v505_v33 = vmul.f32 %v348_v43, %v765_v34  ;;  %v398_v44 = vmul.f32 %v635_v22, %v397_v38  ;;  %vm401_vm11 = vweird.f32 %v635_v22  ;;  %v912_v45 = vadd.f32 1.0, %v637_v42 }
  0xb4   :  { %v586_v46 = vmul.f32 -1.442695, %v906_v41  ;;  %v916_v47 = vadd.f32 %v739_v14, %v174_v30  ;;  %v919_v48 = vadd.f32 %v739_v14, %v163_v35  ;;  %v167_v49 = vmul.f32 %v734_v13, %v133_v40 }
  0xb5   :  { %521 = vst [vmem:[%s1048_s4 + $0x28] sm:$0xff] %v505_v33  ;;  %v399_v19 = vadd.f32 %v635_v22, %v398_v44  ;;  %vm400_vm12 = vweird.f32 %v847_v50  ;;  %642 = vrcp.f32 %v912_v45  ;;  %v407_v52 = vor.u32 1.1754944e-38, %v406_v17 }
  0xb6   :  { %v639_v34 = vpop.eup %638  ;;  %vm402_vm13 = vmor %vm400_vm12, %vm401_vm11  ;;  %644 = vpow2.f32 %v586_v46  ;;  %v590_v20 = vmul.f32 -1.442695, %v916_v47  ;;  %v579_v53 = vmul.f32 -1.442695, %v919_v48  ;;  %vm405_vm14 = vcmp.eq.f32.partialorder %v404_v39, 8.507059e+37 }
  0xb7   :  { %v403_v55 = vsel %vm402_vm13, %v635_v22, %v399_v19  ;;  %v456_v56 = vmul.f32 %v639_v34, %v877_v11  ;;  %v464_v57 = vand.u32 2147483647, %v877_v11  ;;  %v466_v50 = vand.u32 2147483648, %v877_v11 }
  0xb8   :  { %v641_v60 = vpop.eup %640  ;;  %v408_v61 = vsel %vm405_vm14, %v407_v52, %v403_v55  ;;  %646 = vpow2.f32 %v590_v20  ;;  %v933_v62 = vadd.f32 %v739_v14, %v167_v49  ;;  %v175_v3 = vmul.f32 %v734_v13, %v153_v59 }
  0xb9   :  { %v509_v0 = vmul.f32 %v408_v61, %v777_v51  ;;  %v457_v54 = vsub.f32 1.0, %v456_v56  ;;  %v936_v1 = vadd.f32 1.0, %v641_v60  ;;  %648 = vpow2.f32 %v579_v53 }
  0xba   :  { %v583_v2 = vmul.f32 -1.442695, %v933_v62  ;;  %vm461_vm15 = vweird.f32 %v639_v34  ;;  %v171_v6 = vmul.f32 %v734_v13, %v143_v63  ;;  %vm460_vm0 = vweird.f32 %v877_v11 }
  0xbb   :  { %v643_v4 = vpop.eup %642  ;;  %525 = vst [vmem:[%s1048_s4 + $0x48] sm:$0xff] %v509_v0  ;;  %v458_v5 = vmul.f32 %v639_v34, %v457_v54  ;;  %650 = vrcp.f32 %v936_v1  ;;  %vm946_vm1 = vcmp.eq.f32.partialorder %v464_v57, 8.507059e+37  ;;  %v467_v10 = vor.u32 1.1754944e-38, %v466_v50  ;;  %vm462_vm3 = vmor %vm460_vm0, %vm461_vm15 }
  0xbc   :  { %v645_v51 = vpop.eup %644  ;;  %v291_v9 = vmul.f32 %v643_v4, %v912_v45  ;;  %vm295_vm2 = vweird.f32 %v912_v45  ;;  %v299_v13 = vand.u32 2147483647, %v912_v45  ;;  %652 = vpow2.f32 %v583_v2 }
  0xbd   :  { %v459_v58 = vadd.f32 %v639_v34, %v458_v5  ;;  %v952_v31 = vadd.f32 1.0, %v645_v51  ;;  %v956_v11 = vadd.f32 %v739_v14, %v175_v3  ;;  %v301_v24 = vand.u32 2147483648, %v912_v45 }
  0xbe   :  { %v647_v15 = vpop.eup %646  ;;  %v292_v18 = vsub.f32 1.0, %v291_v9  ;;  %v961_v25 = vadd.f32 %v739_v14, %v171_v6  ;;  %vm296_vm4 = vweird.f32 %v643_v4  ;;  %vm300_vm5 = vcmp.eq.f32.partialorder %v299_v13, 8.507059e+37 }
  0xbf   :  { %v649_v22 = vpop.eup %648  ;;  %v463_v23 = vsel %vm462_vm3, %v639_v34, %v459_v58  ;;  %654 = vrcp.f32 %v952_v31  ;;  %v965_v27 = vadd.f32 1.0, %v647_v15  ;;  %vm297_vm6 = vmor %vm295_vm2, %vm296_vm4  ;;  %v302_v14 = vor.u32 1.1754944e-38, %v301_v24 }
  0xc0   :  { %v468_v32 = vsel %vm946_vm1, %v467_v10, %v463_v23  ;;  %v293_v26 = vmul.f32 %v643_v4, %v292_v18  ;;  %v968_v16 = vadd.f32 1.0, %v649_v22  ;;  %v359_v36 = vand.u32 2147483647, %v936_v1 }
  0xc1   :  { %v651_v28 = vpop.eup %650  ;;  %v513_v29 = vmul.f32 %v468_v32, %v801_v8  ;;  %656 = vrcp.f32 %v965_v27  ;;  %v587_v8 = vmul.f32 -1.442695, %v961_v25  ;;  %v361_v40 = vand.u32 2147483648, %v936_v1 }
  0xc2   :  { %v294_v30 = vadd.f32 %v643_v4, %v293_v26  ;;  %v351_v35 = vmul.f32 %v651_v28, %v936_v1  ;;  %v653_v37 = vpop.eup %652  ;;  %658 = vrcp.f32 %v968_v16  ;;  %vm355_vm7 = vweird.f32 %v936_v1 }
  0xc3   :  { %529 = vst [vmem:[%s1048_s4 + $0x68] sm:$0xff] %v513_v29  ;;  %v419_v17 = vand.u32 2147483647, %v952_v31  ;;  %vm356_vm8 = vweird.f32 %v651_v28  ;;  %v421_v46 = vand.u32 2147483648, %v952_v31  ;;  %v986_v49 = vadd.f32 1.0, %v653_v37 }
  0xc4   :  { %v298_v38 = vsel %vm297_vm6, %v643_v4, %v294_v30  ;;  %v352_v39 = vsub.f32 1.0, %v351_v35  ;;  %660 = vpow2.f32 %v587_v8  ;;  %vm360_vm9 = vcmp.eq.f32.partialorder %v359_v36, 8.507059e+37  ;;  %vm357_vm10 = vmor %vm355_vm7, %vm356_vm8 }
  0xc5   :  { %v655_v42 = vpop.eup %654  ;;  %v303_v43 = vsel %vm300_vm5, %v302_v14, %v298_v38  ;;  %v362_v34 = vor.u32 1.1754944e-38, %v361_v40  ;;  %vm415_vm11 = vweird.f32 %v952_v31  ;;  %vm994_vm12 = vcmp.eq.f32.partialorder %v419_v17, 8.507059e+37 }
  0xc6   :  { %v502_v33 = vmul.f32 %v303_v43, %v806_v12  ;;  %v353_v44 = vmul.f32 %v651_v28, %v352_v39  ;;  %v411_v45 = vmul.f32 %v655_v42, %v952_v31  ;;  %662 = vrcp.f32 %v986_v49 }
  0xc7   :  { %v657_v20 = vpop.eup %656  ;;  %v591_v53 = vmul.f32 -1.442695, %v956_v11  ;;  %vm416_vm13 = vweird.f32 %v655_v42  ;;  %v422_v61 = vor.u32 1.1754944e-38, %v421_v46  ;;  %v479_v50 = vand.u32 2147483647, %v965_v27 }
  0xc8   :  { %518 = vst [vmem:[%s1048_s4 + $0x10] sm:$0xff] %v502_v33  ;;  %v354_v19 = vadd.f32 %v651_v28, %v353_v44  ;;  %v412_v52 = vsub.f32 1.0, %v411_v45  ;;  %v659_v55 = vpop.eup %658  ;;  %v471_v59 = vmul.f32 %v657_v20, %v965_v27  ;;  %v481_v2 = vand.u32 2147483648, %v965_v27  ;;  %vm417_vm14 = vmor %vm415_vm11, %vm416_vm13 }
  0xc9   :  { %v306_v63 = vmul.f32 %v659_v55, %v968_v16  ;;  %v314_v5 = vand.u32 2147483647, %v968_v16  ;;  %v316_v6 = vand.u32 2147483648, %v968_v16  ;;  %664 = vpow2.f32 %v591_v53 }
  0xca   :  { %v358_v56 = vsel %vm357_vm10, %v651_v28, %v354_v19  ;;  %v413_v57 = vmul.f32 %v655_v42, %v412_v52  ;;  %v472_v1 = vsub.f32 1.0, %v471_v59  ;;  %v661_v3 = vpop.eup %660  ;;  %vm476_vm15 = vweird.f32 %v657_v20 }
  0xcb   :  { %v363_v60 = vsel %vm360_vm9, %v362_v34, %v358_v56  ;;  %v307_v4 = vsub.f32 1.0, %v306_v63  ;;  %v255_v7 = vadd.f32 1.0, %v661_v3  ;;  %vm475_vm0 = vweird.f32 %v965_v27 }
  0xcc   :  { %v506_v0 = vmul.f32 %v363_v60, %v813_v21  ;;  %v414_v54 = vadd.f32 %v655_v42, %v413_v57  ;;  %v473_v21 = vmul.f32 %v657_v20, %v472_v1  ;;  %v663_v9 = vpop.eup %662  ;;  %vm311_vm1 = vweird.f32 %v659_v55  ;;  %vm477_vm3 = vmor %vm475_vm0, %vm476_vm15 }
  0xcd   :  { %v308_v10 = vmul.f32 %v659_v55, %v307_v4  ;;  %vm310_vm2 = vweird.f32 %v968_v16  ;;  %v366_v18 = vmul.f32 %v663_v9, %v986_v49  ;;  %vm480_vm4 = vcmp.eq.f32.partialorder %v479_v50, 8.507059e+37 }
  0xce   :  { %522 = vst [vmem:[%s1048_s4 + $0x30] sm:$0xff] %v506_v0  ;;  %v418_v51 = vsel %vm417_vm14, %v655_v42, %v414_v54  ;;  %v474_v15 = vadd.f32 %v657_v20, %v473_v21  ;;  %v482_v13 = vor.u32 1.1754944e-38, %v481_v2  ;;  %666 = vrcp.f32 %v255_v7  ;;  %vm312_vm5 = vmor %vm310_vm2, %vm311_vm1 }
  0xcf   :  { %v423_v58 = vsel %vm994_vm12, %v422_v61, %v418_v51  ;;  %v309_v22 = vadd.f32 %v659_v55, %v308_v10  ;;  %vm315_vm6 = vcmp.eq.f32.partialorder %v314_v5, 8.507059e+37  ;;  %v317_v24 = vor.u32 1.1754944e-38, %v316_v6 }
  0xd0   :  { %v510_v31 = vmul.f32 %v423_v58, %v906_v41  ;;  %v478_v23 = vsel %vm477_vm3, %v657_v20, %v474_v15  ;;  %v367_v32 = vsub.f32 1.0, %v366_v18  ;;  %v665_v41 = vpop.eup %664  ;;  %v374_v28 = vand.u32 2147483647, %v986_v49 }
  0xd1   :  { %v483_v26 = vsel %vm480_vm4, %v482_v13, %v478_v23  ;;  %v313_v27 = vsel %vm312_vm5, %v659_v55, %v309_v22  ;;  %v376_v29 = vand.u32 2147483648, %v986_v49  ;;  %vm371_vm7 = vweird.f32 %v663_v9 }
  0xd2   :  { %526 = vst [vmem:[%s1048_s4 + $0x50] sm:$0xff] %v510_v31  ;;  %v514_v16 = vmul.f32 %v483_v26, %v916_v47  ;;  %v318_v30 = vsel %vm315_vm6, %v317_v24, %v313_v27  ;;  %v368_v35 = vmul.f32 %v663_v9, %v367_v32  ;;  %v259_v36 = vadd.f32 1.0, %v665_v41 }
  0xd3   :  { %v503_v14 = vmul.f32 %v318_v30, %v919_v48  ;;  %vm370_vm8 = vweird.f32 %v986_v49  ;;  %v377_v47 = vor.u32 1.1754944e-38, %v376_v29  ;;  %vm375_vm10 = vcmp.eq.f32.partialorder %v374_v28, 8.507059e+37 }
  0xd4   :  { %530 = vst [vmem:[%s1048_s4 + $0x70] sm:$0xff] %v514_v16  ;;  %v369_v8 = vadd.f32 %v663_v9, %v368_v35  ;;  %v667_v37 = vpop.eup %666  ;;  %vm372_vm9 = vmor %vm370_vm8, %vm371_vm7  ;;  %668 = vrcp.f32 %v259_v36  ;;  %v436_v43 = vand.u32 2147483648, %v255_v7  ;;  %v434_v33 = vand.u32 2147483647, %v255_v7 }
  0xd5   :  { %519 = vst [vmem:[%s1048_s4 + $0x18] sm:$0xff] %v503_v14  ;;  %v426_v39 = vmul.f32 %v667_v37, %v255_v7  ;;  %vm431_vm11 = vweird.f32 %v667_v37  ;;  %vm430_vm12 = vweird.f32 %v255_v7  ;;  %v494_v53 = vand.u32 2147483647, %v259_v36 }
  0xd6   :  { %v373_v38 = vsel %vm372_vm9, %v663_v9, %v369_v8  ;;  %vm432_vm13 = vmor %vm430_vm12, %vm431_vm11  ;;  %v437_v49 = vor.u32 1.1754944e-38, %v436_v43  ;;  %vm435_vm14 = vcmp.eq.f32.partialorder %v434_v33, 8.507059e+37  ;;  %vm490_vm0 = vweird.f32 %v259_v36 }
  0xd7   :  { %v378_v48 = vsel %vm375_vm10, %v377_v47, %v373_v38  ;;  %v427_v42 = vsub.f32 1.0, %v426_v39  ;;  %vm495_vm2 = vcmp.eq.f32.partialorder %v494_v53, 8.507059e+37 }
  0xd8   :  { %v507_v40 = vmul.f32 %v378_v48, %v933_v62  ;;  %v496_v62 = vand.u32 2147483648, %v259_v36 }
  0xd9   :  { %v428_v17 = vmul.f32 %v667_v37, %v427_v42 }
  0xda   :  { %523 = vst [vmem:[%s1048_s4 + $0x38] sm:$0xff] %v507_v40  ;;  %v669_v44 = vpop.eup %668  ;;  %v497_v56 = vor.u32 1.1754944e-38, %v496_v62 }
  0xdb   :  { %v429_v45 = vadd.f32 %v667_v37, %v428_v17  ;;  %v486_v46 = vmul.f32 %v669_v44, %v259_v36  ;;  %vm491_vm15 = vweird.f32 %v669_v44 }
  0xdc   :  { %vm492_vm1 = vmor %vm490_vm0, %vm491_vm15 }
  0xdd   :  { %v433_v19 = vsel %vm432_vm13, %v667_v37, %v429_v45  ;;  %v487_v34 = vsub.f32 1.0, %v486_v46 }
  0xde   :  { %v438_v52 = vsel %vm435_vm14, %v437_v49, %v433_v19 }
  0xdf   :  { %v511_v20 = vmul.f32 %v438_v52, %v961_v25  ;;  %v488_v12 = vmul.f32 %v669_v44, %v487_v34 }
  0xe1   :  { %527 = vst [vmem:[%s1048_s4 + $0x58] sm:$0xff] %v511_v20  ;;  %v489_v55 = vadd.f32 %v669_v44, %v488_v12 }
  0xe3   :  { %v493_v57 = vsel %vm492_vm1, %v669_v44, %v489_v55 }
  0xe4   :  { %v498_v59 = vsel %vm495_vm2, %v497_v56, %v493_v57 }
  0xe5   :  { %v515_v60 = vmul.f32 %v498_v59, %v956_v11 }
  0xe7   :  { %531 = vst [vmem:[%s1048_s4 + $0x78] sm:$0xff] %v515_v60 }

// kernel: csp_rep_layer.16
= control target key start
LH: loop header
LB: loop body
LE: loop exit
PB: predicated region body
PF: predicated region fallthrough
CT: control target
= control target key end

     0   :  { %vm546_vm0 = vcmask 392192   ;;  %s2328_s1 = inlined_call_operand.vmem [shape: bf16[560,128], index: 1, kind: input, shape index: {}]   ;;  %s2329_s0 = inlined_call_operand.vmem [shape: bf16[128,560], index: 0, kind: input, shape index: {}]   ;;  %s2330_s2 = inlined_call_operand.vmem [shape: f32[1,128], index: 2, kind: input, shape index: {}]   ;;  %s2331_s3 = inlined_call_operand.vmem [shape: f32[1,128], index: 3, kind: input, shape index: {}]   ;;  %s2332_s4 = inlined_call_operand.vmem [shape: f32[128,128], index: 4, kind: output, shape index: {}]  }
   0x1   :  { %v1567_v0 = vld [vmem:[%s2328_s1 + $0x38] sm:$0xff]  ;;  %v1566_v1 = vld [vmem:[%s2328_s1 + $0x30] sm:$0xff]  ;;  %v1565_v2 = vld [vmem:[%s2328_s1 + $0x28] sm:$0xff] }
   0x2   :  { %1595 = vmatpush.bf16.msra.mxu1 %v1567_v0  ;;  %1596 = vmatpush.bf16.msra.mxu2 %v1567_v0  ;;  %v1564_v3 = vld [vmem:[%s2328_s1 + $0x20] sm:$0xff]  ;;  %v1563_v4 = vld [vmem:[%s2328_s1 + $0x18] sm:$0xff]  ;;  %v1562_v5 = vld [vmem:[%s2328_s1 + $0x10] sm:$0xff] }
   0x3   :  { %1597 = vmatpush.bf16.msra.mxu3 %v1567_v0  ;;  %571 = vmatpush.bf16.msra.mxu0 %v1567_v0  ;;  %v1561_v6 = vld [vmem:[%s2328_s1 + $0x8] sm:$0xff]  ;;  %v1560_v7 = vld [vmem:[%s2328_s1] sm:$0xff]  ;;  %v1238_v8 = vld [vmem:[%s2329_s0 + $0x50] sm:$0xf] }
   0x4   :  { %v1532_v9 = vld [vmem:[%s2329_s0 + $0x60] sm:$0xf0]  ;;  %v1278_v10 = vld [vmem:[%s2329_s0 + $0xa0] sm:$0xf]  ;;  %v1542_v11 = vld [vmem:[%s2329_s0 + $0xb0] sm:$0xf0] }
   0x5   :  { %v1318_v12 = vld [vmem:[%s2329_s0 + $0xf0] sm:$0xf]  ;;  %v1552_v13 = vld [vmem:[%s2329_s0 + $0x100] sm:$0xf0]  ;;  %v1198_v14 = vld [vmem:[%s2329_s0] sm:$0xf]  ;;  %v1239_v18 = vor.u32 %v1532_v9, %v1238_v8  ;;  %v1279_v19 = vor.u32 %v1542_v11, %v1278_v10 }
   0x6   :  { %1598 = vmatpush.bf16.msra.mxu1 %v1566_v1  ;;  %1599 = vmatpush.bf16.msra.mxu2 %v1566_v1  ;;  %v1522_v15 = vld [vmem:[%s2329_s0 + $0x10] sm:$0xf0]  ;;  %v1583_v16 = vld [vmem:[%s2328_s1 + $0xb8] sm:$0xff]  ;;  %v1319_v20 = vor.u32 %v1552_v13, %v1318_v12  ;;  %v1593_v27 = vld [vmem:[%s2328_s1 + $0x108] sm:$0xff] }
   0x7   :  { %1600 = vmatpush.bf16.msra.mxu3 %v1566_v1  ;;  %572 = vmatpush.bf16.msra.mxu0 %v1566_v1  ;;  %v1575_v17 = vld [vmem:[%s2328_s1 + $0x78] sm:$0xff]  ;;  %v1199_v21 = vor.u32 %v1522_v15, %v1198_v14  ;;  %v1594_v23 = vld [vmem:[%s2328_s1 + $0x110] sm:$0xff]  ;;  %v1581_v28 = vld [vmem:[%s2328_s1 + $0xa8] sm:$0xff] }
   0x8   :  { %v1591_v22 = vld [vmem:[%s2328_s1 + $0xf8] sm:$0xff]  ;;  %v1582_v24 = vld [vmem:[%s2328_s1 + $0xb0] sm:$0xff]  ;;  %v1573_v29 = vld [vmem:[%s2328_s1 + $0x68] sm:$0xff] }
   0x9   :  { %v1574_v25 = vld [vmem:[%s2328_s1 + $0x70] sm:$0xff]  ;;  %v1589_v30 = vld [vmem:[%s2328_s1 + $0xe8] sm:$0xff]  ;;  %v1592_v31 = vld [vmem:[%s2328_s1 + $0x100] sm:$0xff] }
   0xa   :  { %1601 = vmatpush.bf16.msra.mxu1 %v1565_v2  ;;  %1602 = vmatpush.bf16.msra.mxu2 %v1565_v2  ;;  %v1590_v26 = vld [vmem:[%s2328_s1 + $0xf0] sm:$0xff]  ;;  %v1580_v32 = vld [vmem:[%s2328_s1 + $0xa0] sm:$0xff]  ;;  %v1258_v35 = vld [vmem:[%s2329_s0 + $0x78] sm:$0xf] }
   0xb   :  { %1603 = vmatpush.bf16.msra.mxu3 %v1565_v2  ;;  %573 = vmatpush.bf16.msra.mxu0 %v1565_v2  ;;  %v1572_v33 = vld [vmem:[%s2328_s1 + $0x60] sm:$0xff]  ;;  %v1537_v36 = vld [vmem:[%s2329_s0 + $0x88] sm:$0xf0]  ;;  %v1298_v37 = vld [vmem:[%s2329_s0 + $0xc8] sm:$0xf] }
   0xc   :  { %v1588_v34 = vld [vmem:[%s2328_s1 + $0xe0] sm:$0xff]  ;;  %v1547_v38 = vld [vmem:[%s2329_s0 + $0xd8] sm:$0xf0]  ;;  %v1338_v39 = vld [vmem:[%s2329_s0 + $0x118] sm:$0xf]  ;;  %v1259_v45 = vor.u32 %v1537_v36, %v1258_v35 }
   0xd   :  { %v1557_v40 = vld [vmem:[%s2329_s0 + $0x128] sm:$0xf0]  ;;  %v1218_v41 = vld [vmem:[%s2329_s0 + $0x28] sm:$0xf]  ;;  %v1527_v42 = vld [vmem:[%s2329_s0 + $0x38] sm:$0xf0]  ;;  %v1299_v46 = vor.u32 %v1547_v38, %v1298_v37 }
   0xe   :  { %1604 = vmatpush.bf16.msra.mxu1 %v1564_v3  ;;  %1605 = vmatpush.bf16.msra.mxu2 %v1564_v3  ;;  %v1579_v43 = vld [vmem:[%s2328_s1 + $0x98] sm:$0xff]  ;;  %v1339_v47 = vor.u32 %v1557_v40, %v1338_v39  ;;  %v1219_v48 = vor.u32 %v1527_v42, %v1218_v41  ;;  %v1578_v50 = vld [vmem:[%s2328_s1 + $0x90] sm:$0xff]  ;;  %v1577_v53 = vld [vmem:[%s2328_s1 + $0x88] sm:$0xff] }
   0xf   :  { %1606 = vmatpush.bf16.msra.mxu3 %v1564_v3  ;;  %574 = vmatpush.bf16.msra.mxu0 %v1564_v3  ;;  %v1571_v44 = vld [vmem:[%s2328_s1 + $0x58] sm:$0xff]  ;;  %v1570_v51 = vld [vmem:[%s2328_s1 + $0x50] sm:$0xff]  ;;  %v1569_v54 = vld [vmem:[%s2328_s1 + $0x48] sm:$0xff] }
  0x10   :  { %v1587_v49 = vld [vmem:[%s2328_s1 + $0xd8] sm:$0xff]  ;;  %v1586_v52 = vld [vmem:[%s2328_s1 + $0xd0] sm:$0xff]  ;;  %v1585_v55 = vld [vmem:[%s2328_s1 + $0xc8] sm:$0xff] }
  0x11   :  { %v1576_v56 = vld [vmem:[%s2328_s1 + $0x80] sm:$0xff]  ;;  %v1200_v60 = vld [vmem:[%s2329_s0 + $0x14] sm:$0xf0]  ;;  %v1206_v61 = vld [vmem:[%s2329_s0 + $0x8] sm:$0xf] }
  0x12   :  { %1607 = vmatpush.bf16.msra.mxu1 %v1563_v4  ;;  %1608 = vmatpush.bf16.msra.mxu2 %v1563_v4  ;;  %v1568_v57 = vld [vmem:[%s2328_s1 + $0x40] sm:$0xff]  ;;  %v1523_v62 = vld [vmem:[%s2329_s0 + $0x18] sm:$0xf0]  ;;  %v1521_v63 = vld [vmem:[%s2329_s0 + $0xc] sm:$0xf] }
  0x13   :  { %1609 = vmatpush.bf16.msra.mxu3 %v1563_v4  ;;  %575 = vmatpush.bf16.msra.mxu0 %v1563_v4  ;;  %v1584_v58 = vld [vmem:[%s2328_s1 + $0xc0] sm:$0xff]  ;;  %v1214_v1 = vld [vmem:[%s2329_s0 + $0x10] sm:$0xf]  ;;  %v1207_v4 = vor.u32 %v1523_v62, %v1206_v61  ;;  %v1526_v11 = vld [vmem:[%s2329_s0 + $0x34] sm:$0xf] }
  0x14   :  { %v1520_v59 = vld [vmem:[%s2329_s0 + $0x4] sm:$0xf]  ;;  %v1208_v0 = vld [vmem:[%s2329_s0 + $0x1c] sm:$0xf0]  ;;  %v1226_v9 = vld [vmem:[%s2329_s0 + $0x30] sm:$0xf] }
  0x15   :  { %v1524_v2 = vld [vmem:[%s2329_s0 + $0x20] sm:$0xf0]  ;;  %v1203_v3 = vor.u32 %v1520_v59, %v1200_v60  ;;  %v1220_v8 = vld [vmem:[%s2329_s0 + $0x3c] sm:$0xf0]  ;;  %v1228_v12 = vld [vmem:[%s2329_s0 + $0x44] sm:$0xf0] }
  0x16   :  { %1610 = vmatpush.bf16.msra.mxu1 %v1562_v5  ;;  %1611 = vmatpush.bf16.msra.mxu2 %v1562_v5  ;;  %v1528_v10 = vld [vmem:[%s2329_s0 + $0x40] sm:$0xf0]  ;;  %v1234_v13 = vld [vmem:[%s2329_s0 + $0x38] sm:$0xf]  ;;  %v1529_v14 = vld [vmem:[%s2329_s0 + $0x48] sm:$0xf0] }
  0x17   :  { %1612 = vmatpush.bf16.msra.mxu3 %v1562_v5  ;;  %576 = vmatpush.bf16.msra.mxu0 %v1562_v5  ;;  %v1211_v5 = vor.u32 %v1521_v63, %v1208_v0  ;;  %v1536_v35 = vld [vmem:[%s2329_s0 + $0x84] sm:$0xf]  ;;  %v1268_v36 = vld [vmem:[%s2329_s0 + $0x94] sm:$0xf0]  ;;  %v1274_v37 = vld [vmem:[%s2329_s0 + $0x88] sm:$0xf] }
  0x18   :  { %v1539_v38 = vld [vmem:[%s2329_s0 + $0x98] sm:$0xf0]  ;;  %v1271_v41 = vor.u32 %v1536_v35, %v1268_v36  ;;  %v1546_v59 = vld [vmem:[%s2329_s0 + $0xd4] sm:$0xf]  ;;  %v1308_v60 = vld [vmem:[%s2329_s0 + $0xe4] sm:$0xf0] }
  0x19   :  { %v1275_v42 = vor.u32 %v1539_v38, %v1274_v37  ;;  %v1314_v61 = vld [vmem:[%s2329_s0 + $0xd8] sm:$0xf]  ;;  %v1549_v62 = vld [vmem:[%s2329_s0 + $0xe8] sm:$0xf0] }
  0x1a   :  { %1613 = vmatpush.bf16.msra.mxu1 %v1561_v6  ;;  %1614 = vmatpush.bf16.msra.mxu2 %v1561_v6 }
  0x1b   :  { %1615 = vmatpush.bf16.msra.mxu3 %v1561_v6  ;;  %577 = vmatpush.bf16.msra.mxu0 %v1561_v6  ;;  %v1215_v6 = vor.u32 %v1524_v2, %v1214_v1  ;;  %v1311_v1 = vor.u32 %v1546_v59, %v1308_v60  ;;  %v1315_v2 = vor.u32 %v1549_v62, %v1314_v61 }
  0x1e   :  { %1616 = vmatpush.bf16.msra.mxu1 %v1560_v7  ;;  %1617 = vmatpush.bf16.msra.mxu2 %v1560_v7 }
  0x1f   :  { %1618 = vmatpush.bf16.msra.mxu3 %v1560_v7  ;;  %578 = vmatpush.bf16.msra.mxu0 %v1560_v7  ;;  %v1525_v7 = vld [vmem:[%s2329_s0 + $0x2c] sm:$0xf] }
  0x20   :  { %v1223_v15 = vor.u32 %v1525_v7, %v1220_v8  ;;  %v1551_v7 = vld [vmem:[%s2329_s0 + $0xfc] sm:$0xf]  ;;  %v1328_v8 = vld [vmem:[%s2329_s0 + $0x10c] sm:$0xf0] }
  0x21   :  { %589 = vmatmul.bf16.vlgmr.msra.gmra.mxu1 %v1239_v18  ;;  %599 = vmatmul.bf16.vlgmr.msra.gmra.mxu2 %v1279_v19  ;;  %v1235_v18 = vor.u32 %v1529_v14, %v1234_v13  ;;  %v1530_v19 = vld [vmem:[%s2329_s0 + $0x54] sm:$0xf]  ;;  %v1331_v14 = vor.u32 %v1551_v7, %v1328_v8 }
  0x22   :  { %669 = vmatpush.bf16.msrb.mxu2 %v1583_v16  ;;  %620 = vmatpush.bf16.msrb.mxu1 %v1575_v17  ;;  %v1227_v16 = vor.u32 %v1528_v10, %v1226_v9  ;;  %v1231_v17 = vor.u32 %v1526_v11, %v1228_v12  ;;  %v1334_v9 = vld [vmem:[%s2329_s0 + $0x100] sm:$0xf]  ;;  %v1554_v10 = vld [vmem:[%s2329_s0 + $0x110] sm:$0xf0] }
  0x23   :  { %609 = vmatmul.bf16.vlgmr.msra.gmra.mxu3 %v1319_v20  ;;  %579 = vmatmul.bf16.vlgmr.msra.gmra.mxu0 %v1199_v21  ;;  %v1240_v20 = vld [vmem:[%s2329_s0 + $0x64] sm:$0xf0]  ;;  %v1246_v21 = vld [vmem:[%s2329_s0 + $0x58] sm:$0xf] }
  0x24   :  { %718 = vmatpush.bf16.msrb.mxu3 %v1591_v22  ;;  %772 = vmatpush.bf16.msrb.mxu0 %v1594_v23  ;;  %v1533_v22 = vld [vmem:[%s2329_s0 + $0x68] sm:$0xf0]  ;;  %v1531_v23 = vld [vmem:[%s2329_s0 + $0x5c] sm:$0xf] }
  0x26   :  { %670 = vmatpush.bf16.msrb.mxu2 %v1582_v24  ;;  %621 = vmatpush.bf16.msrb.mxu1 %v1574_v25  ;;  %v1248_v24 = vld [vmem:[%s2329_s0 + $0x6c] sm:$0xf0]  ;;  %v1254_v25 = vld [vmem:[%s2329_s0 + $0x60] sm:$0xf] }
  0x28   :  { %719 = vmatpush.bf16.msrb.mxu3 %v1590_v26  ;;  %773 = vmatpush.bf16.msrb.mxu0 %v1593_v27  ;;  %v1534_v26 = vld [vmem:[%s2329_s0 + $0x70] sm:$0xf0]  ;;  %v1243_v27 = vor.u32 %v1530_v19, %v1240_v20 }
  0x2a   :  { %671 = vmatpush.bf16.msrb.mxu2 %v1581_v28  ;;  %622 = vmatpush.bf16.msrb.mxu1 %v1573_v29  ;;  %v1247_v28 = vor.u32 %v1533_v22, %v1246_v21  ;;  %v1251_v29 = vor.u32 %v1531_v23, %v1248_v24  ;;  %v1555_v21 = vld [vmem:[%s2329_s0 + $0x11c] sm:$0xf]  ;;  %v1340_v22 = vld [vmem:[%s2329_s0 + $0x12c] sm:$0xf0]  ;;  %v1346_v23 = vld [vmem:[%s2329_s0 + $0x120] sm:$0xf] }
  0x2b   :  { %v1558_v24 = vld [vmem:[%s2329_s0 + $0x130] sm:$0xf0] }
  0x2c   :  { %720 = vmatpush.bf16.msrb.mxu3 %v1589_v30  ;;  %774 = vmatpush.bf16.msrb.mxu0 %v1592_v31  ;;  %v1255_v30 = vor.u32 %v1534_v26, %v1254_v25  ;;  %v1535_v31 = vld [vmem:[%s2329_s0 + $0x7c] sm:$0xf]  ;;  %v1556_v25 = vld [vmem:[%s2329_s0 + $0x124] sm:$0xf]  ;;  %v1348_v26 = vld [vmem:[%s2329_s0 + $0x134] sm:$0xf0] }
  0x2e   :  { %672 = vmatpush.bf16.msrb.mxu2 %v1580_v32  ;;  %623 = vmatpush.bf16.msrb.mxu1 %v1572_v33  ;;  %v1260_v32 = vld [vmem:[%s2329_s0 + $0x8c] sm:$0xf0]  ;;  %v1266_v33 = vld [vmem:[%s2329_s0 + $0x80] sm:$0xf] }
  0x2f   :  { %v1263_v39 = vor.u32 %v1535_v31, %v1260_v32  ;;  %v1343_v31 = vor.u32 %v1555_v21, %v1340_v22  ;;  %v1347_v32 = vor.u32 %v1558_v24, %v1346_v23 }
  0x30   :  { %721 = vmatpush.bf16.msrb.mxu3 %v1588_v34  ;;  %v1538_v34 = vld [vmem:[%s2329_s0 + $0x90] sm:$0xf0] }
  0x31   :  { %594 = vmatmul.bf16.gmra.mxu1 %v1259_v45  ;;  %604 = vmatmul.bf16.gmra.mxu2 %v1299_v46  ;;  %v1267_v40 = vor.u32 %v1538_v34, %v1266_v33  ;;  %v1286_v45 = vld [vmem:[%s2329_s0 + $0xa8] sm:$0xf]  ;;  %v1543_v46 = vld [vmem:[%s2329_s0 + $0xb8] sm:$0xf0]  ;;  %v1351_v34 = vor.u32 %v1556_v25, %v1348_v26 }
  0x32   :  { %673 = vmatpush.bf16.msrb.mxu2 %v1579_v43  ;;  %624 = vmatpush.bf16.msrb.mxu1 %v1571_v44  ;;  %v1540_v43 = vld [vmem:[%s2329_s0 + $0xa4] sm:$0xf]  ;;  %v1280_v44 = vld [vmem:[%s2329_s0 + $0xb4] sm:$0xf0] }
  0x33   :  { %614 = vmatmul.bf16.gmra.mxu3 %v1339_v47  ;;  %584 = vmatmul.bf16.gmra.mxu0 %v1219_v48  ;;  %v1541_v47 = vld [vmem:[%s2329_s0 + $0xac] sm:$0xf]  ;;  %v1288_v48 = vld [vmem:[%s2329_s0 + $0xbc] sm:$0xf0] }
  0x34   :  { %722 = vmatpush.bf16.msrb.mxu3 %v1587_v49  ;;  %v1294_v49 = vld [vmem:[%s2329_s0 + $0xb0] sm:$0xf] }
  0x36   :  { %674 = vmatpush.bf16.msrb.mxu2 %v1578_v50  ;;  %625 = vmatpush.bf16.msrb.mxu1 %v1570_v51  ;;  %v1544_v50 = vld [vmem:[%s2329_s0 + $0xc0] sm:$0xf0]  ;;  %v1283_v51 = vor.u32 %v1540_v43, %v1280_v44 }
  0x38   :  { %723 = vmatpush.bf16.msrb.mxu3 %v1586_v52  ;;  %v1287_v52 = vor.u32 %v1543_v46, %v1286_v45 }
  0x3a   :  { %675 = vmatpush.bf16.msrb.mxu2 %v1577_v53  ;;  %626 = vmatpush.bf16.msrb.mxu1 %v1569_v54  ;;  %v1291_v53 = vor.u32 %v1541_v47, %v1288_v48  ;;  %v1295_v54 = vor.u32 %v1544_v50, %v1294_v49 }
  0x3c   :  { %724 = vmatpush.bf16.msrb.mxu3 %v1585_v55  ;;  %v1545_v55 = vld [vmem:[%s2329_s0 + $0xcc] sm:$0xf] }
  0x3e   :  { %676 = vmatpush.bf16.msrb.mxu2 %v1576_v56  ;;  %627 = vmatpush.bf16.msrb.mxu1 %v1568_v57  ;;  %v1300_v56 = vld [vmem:[%s2329_s0 + $0xdc] sm:$0xf0]  ;;  %v1306_v57 = vld [vmem:[%s2329_s0 + $0xd0] sm:$0xf] }
  0x3f   :  { %v1303_v63 = vor.u32 %v1545_v55, %v1300_v56 }
  0x40   :  { %725 = vmatpush.bf16.msrb.mxu3 %v1584_v58  ;;  %v1548_v58 = vld [vmem:[%s2329_s0 + $0xe0] sm:$0xf0] }
  0x41   :  { %628 = vmatmul.bf16.vlgmr.msrb.gmra.mxu1 %v1203_v3  ;;  %677 = vmatmul.bf16.vlgmr.msrb.gmra.mxu2 %v1207_v4  ;;  %v1307_v0 = vor.u32 %v1548_v58, %v1306_v57  ;;  %v1550_v3 = vld [vmem:[%s2329_s0 + $0xf4] sm:$0xf]  ;;  %v1320_v4 = vld [vmem:[%s2329_s0 + $0x104] sm:$0xf0] }
  0x42   :  { %v1323_v11 = vor.u32 %v1550_v3, %v1320_v4 }
  0x43   :  { %726 = vmatmul.bf16.vlgmr.msrb.gmra.mxu3 %v1211_v5  ;;  %1496 = vmatmul.msk.bf16.vlgmr.msrb.gmra.mxu0 %vm546_vm0, %v1215_v6  ;;  %v1326_v5 = vld [vmem:[%s2329_s0 + $0xf8] sm:$0xf]  ;;  %v1553_v6 = vld [vmem:[%s2329_s0 + $0x108] sm:$0xf0] }
  0x44   :  { %v1327_v12 = vor.u32 %v1553_v6, %v1326_v5 }
  0x51   :  { %633 = vmatmul.bf16.gmra.mxu1 %v1223_v15  ;;  %682 = vmatmul.bf16.gmra.mxu2 %v1227_v16  ;;  %v1335_v15 = vor.u32 %v1554_v10, %v1334_v9 }
  0x53   :  { %731 = vmatmul.bf16.gmra.mxu3 %v1231_v17  ;;  %1497 = vmatmul.msk.bf16.gmra.mxu0 %vm546_vm0, %v1235_v18 }
  0x61   :  { %638 = vmatmul.bf16.gmra.mxu1 %v1243_v27  ;;  %687 = vmatmul.bf16.gmra.mxu2 %v1247_v28  ;;  %v1354_v27 = vld [vmem:[%s2329_s0 + $0x128] sm:$0xf]  ;;  %v1559_v28 = vld [vmem:[%s2329_s0 + $0x138] sm:$0xf0] }
  0x62   :  { %v1355_v35 = vor.u32 %v1559_v28, %v1354_v27 }
  0x63   :  { %736 = vmatmul.bf16.gmra.mxu3 %v1251_v29  ;;  %1498 = vmatmul.msk.bf16.gmra.mxu0 %vm546_vm0, %v1255_v30 }
  0x71   :  { %643 = vmatmul.bf16.gmra.mxu1 %v1263_v39  ;;  %692 = vmatmul.bf16.gmra.mxu2 %v1267_v40 }
  0x73   :  { %741 = vmatmul.bf16.gmra.mxu3 %v1271_v41  ;;  %1499 = vmatmul.msk.bf16.gmra.mxu0 %vm546_vm0, %v1275_v42 }
  0x81   :  { %648 = vmatmul.bf16.gmra.mxu1 %v1283_v51  ;;  %697 = vmatmul.bf16.gmra.mxu2 %v1287_v52  ;;  %v2090_v51 = vld [vmem:[%s2330_s2] ss:$0 sm:$0xff] }
  0x83   :  { %746 = vmatmul.bf16.gmra.mxu3 %v1291_v53  ;;  %1500 = vmatmul.msk.bf16.gmra.mxu0 %vm546_vm0, %v1295_v54  ;;  %v2095_v54 = vld [vmem:[%s2331_s3] ss:$0 sm:$0xff] }
  0x91   :  { %653 = vmatmul.bf16.gmra.mxu1 %v1303_v63  ;;  %702 = vmatmul.bf16.gmra.mxu2 %v1307_v0 }
  0x93   :  { %751 = vmatmul.bf16.gmra.mxu3 %v1311_v1  ;;  %1501 = vmatmul.msk.bf16.gmra.mxu0 %vm546_vm0, %v1315_v2 }
  0x9e   :  { %v2037_v13 = vpop.f32.mrf.mxu1 }
  0xa0   :  { %v580_v16 = vpop.f32.mrf.mxu0 }
  0xa1   :  { %658 = vmatmul.bf16.gmra.mxu1 %v1323_v11  ;;  %707 = vmatmul.bf16.gmra.mxu2 %v1327_v12 }
  0xa3   :  { %756 = vmatmul.bf16.gmra.mxu3 %v1331_v14  ;;  %1502 = vmatmul.msk.bf16.gmra.mxu0 %vm546_vm0, %v1335_v15 }
  0xa4   :  { %v2040_v17 = vpop.f32.mrf.mxu2 }
  0xa6   :  { %v2042_v18 = vpop.f32.mrf.mxu3  ;;  %v2044_v19 = vpop.f32.mrf.mxu1 }
  0xa8   :  { %v582_v20 = vpop.f32.mrf.mxu0 }
  0xac   :  { %v2070_v29 = vpop.f32.mrf.mxu2 }
  0xae   :  { %v2072_v30 = vpop.f32.mrf.mxu3  ;;  %v2074_v33 = vpop.f32.mrf.mxu1 }
  0xb0   :  { %v585_v36 = vpop.f32.mrf.mxu0 }
  0xb1   :  { %663 = vmatmul.bf16.gmra.mxu1 %v1343_v31  ;;  %712 = vmatmul.bf16.gmra.mxu2 %v1347_v32 }
  0xb3   :  { %761 = vmatmul.bf16.gmra.mxu3 %v1351_v34  ;;  %1503 = vmatmul.msk.bf16.gmra.mxu0 %vm546_vm0, %v1355_v35 }
  0xb4   :  { %v2077_v37 = vpop.f32.mrf.mxu2 }
  0xb6   :  { %v2079_v38 = vpop.f32.mrf.mxu3  ;;  %v2081_v39 = vpop.f32.mrf.mxu1 }
  0xb8   :  { %v587_v40 = vpop.f32.mrf.mxu0 }
  0xbc   :  { %v2083_v41 = vpop.f32.mrf.mxu2 }
  0xbe   :  { %v2085_v42 = vpop.f32.mrf.mxu3  ;;  %v629_v43 = vpop.f32.mrf.mxu1 }
  0xbf   :  { %v630_v45 = vadd.f32 %v629_v43, %v580_v16 }
  0xc0   :  { %v776_v44 = vpop.f32.mrf.mxu0 }
  0xc4   :  { %v678_v46 = vpop.f32.mrf.mxu2 }
  0xc5   :  { %v679_v47 = vadd.f32 %v678_v46, %v630_v45 }
  0xc6   :  { %v727_v48 = vpop.f32.mrf.mxu3  ;;  %v631_v49 = vpop.f32.mrf.mxu1 }
  0xc7   :  { %v728_v50 = vadd.f32 %v727_v48, %v679_v47  ;;  %v632_v56 = vadd.f32 %v631_v49, %v582_v20 }
  0xc8   :  { %v778_v52 = vpop.f32.mrf.mxu0 }
  0xc9   :  { %v777_v53 = vadd.f32 %v776_v44, %v728_v50 }
  0xcb   :  { %v820_v55 = vmul.f32 %v2090_v51, %v777_v53 }
  0xcc   :  { %v680_v57 = vpop.f32.mrf.mxu2 }
  0xcd   :  { %v2099_v58 = vadd.f32 %v2095_v54, %v820_v55  ;;  %v681_v59 = vadd.f32 %v680_v57, %v632_v56 }
  0xce   :  { %v729_v60 = vpop.f32.mrf.mxu3  ;;  %v634_v61 = vpop.f32.mrf.mxu1 }
  0xcf   :  { %v1504_v62 = vmul.f32 -1.442695, %v2099_v58  ;;  %v730_v63 = vadd.f32 %v729_v60, %v681_v59  ;;  %v635_v3 = vadd.f32 %v634_v61, %v585_v36 }
  0xd0   :  { %v781_v0 = vpop.f32.mrf.mxu0 }
  0xd1   :  { %1621 = vpow2.f32 %v1504_v62  ;;  %v779_v1 = vadd.f32 %v778_v52, %v730_v63 }
  0xd3   :  { %v821_v2 = vmul.f32 %v2090_v51, %v779_v1 }
  0xd4   :  { %v683_v4 = vpop.f32.mrf.mxu2 }
  0xd5   :  { %v2104_v5 = vadd.f32 %v2095_v54, %v821_v2  ;;  %v684_v6 = vadd.f32 %v683_v4, %v635_v3 }
  0xd6   :  { %v732_v7 = vpop.f32.mrf.mxu3  ;;  %v636_v8 = vpop.f32.mrf.mxu1 }
  0xd7   :  { %v1622_v9 = vpop.eup %1621  ;;  %v1505_v10 = vmul.f32 -1.442695, %v2104_v5  ;;  %v733_v11 = vadd.f32 %v732_v7, %v684_v6  ;;  %v637_v20 = vadd.f32 %v636_v8, %v587_v40 }
  0xd8   :  { %v783_v12 = vpop.f32.mrf.mxu0  ;;  %v904_v14 = vadd.f32 1.0, %v1622_v9 }
  0xd9   :  { %1623 = vpow2.f32 %v1505_v10  ;;  %v782_v15 = vadd.f32 %v781_v0, %v733_v11 }
  0xda   :  { %1625 = vrcp.f32 %v904_v14  ;;  %v929_v45 = vand.u32 2147483647, %v904_v14  ;;  %v931_v46 = vand.u32 2147483648, %v904_v14  ;;  %vm925_vm2 = vweird.f32 %v904_v14 }
  0xdb   :  { %v822_v16 = vmul.f32 %v2090_v51, %v782_v15 }
  0xdc   :  { %v685_v21 = vpop.f32.mrf.mxu2  ;;  %vm930_vm4 = vcmp.eq.f32.partialorder %v929_v45, 8.507059e+37 }
  0xdd   :  { %v2109_v22 = vadd.f32 %v2095_v54, %v822_v16  ;;  %v686_v23 = vadd.f32 %v685_v21, %v637_v20 }
  0xde   :  { %v734_v24 = vpop.f32.mrf.mxu3  ;;  %v639_v25 = vpop.f32.mrf.mxu1 }
  0xdf   :  { %v1624_v26 = vpop.eup %1623  ;;  %v1506_v27 = vmul.f32 -1.442695, %v2109_v22  ;;  %v735_v28 = vadd.f32 %v734_v24, %v686_v23  ;;  %v640_v44 = vadd.f32 %v639_v25, %v2037_v13  ;;  %v932_v13 = vor.u32 1.1754944e-38, %v931_v46 }
  0xe0   :  { %v786_v31 = vpop.f32.mrf.mxu0  ;;  %v1626_v32 = vpop.eup %1625  ;;  %v905_v34 = vadd.f32 1.0, %v1624_v26 }
  0xe1   :  { %v921_v35 = vmul.f32 %v1626_v32, %v904_v14  ;;  %1627 = vpow2.f32 %v1506_v27  ;;  %v784_v36 = vadd.f32 %v783_v12, %v735_v28  ;;  %vm926_vm1 = vweird.f32 %v1626_v32 }
  0xe2   :  { %1629 = vrcp.f32 %v905_v34  ;;  %vm927_vm3 = vmor %vm925_vm2, %vm926_vm1  ;;  %v944_v7 = vand.u32 2147483647, %v905_v34  ;;  %v946_v8 = vand.u32 2147483648, %v905_v34  ;;  %vm940_vm6 = vweird.f32 %v905_v34 }
  0xe3   :  { %v922_v43 = vsub.f32 1.0, %v921_v35  ;;  %v823_v40 = vmul.f32 %v2090_v51, %v784_v36 }
  0xe4   :  { %v688_v47 = vpop.f32.mrf.mxu2  ;;  %v947_v23 = vor.u32 1.1754944e-38, %v946_v8  ;;  %vm945_vm8 = vcmp.eq.f32.partialorder %v944_v7, 8.507059e+37 }
  0xe5   :  { %v923_v48 = vmul.f32 %v1626_v32, %v922_v43  ;;  %v2115_v49 = vadd.f32 %v2095_v54, %v823_v40  ;;  %v689_v50 = vadd.f32 %v688_v47, %v640_v44 }
  0xe6   :  { %v737_v52 = vpop.f32.mrf.mxu3  ;;  %v641_v53 = vpop.f32.mrf.mxu1 }
  0xe7   :  { %v1628_v55 = vpop.eup %1627  ;;  %v924_v56 = vadd.f32 %v1626_v32, %v923_v48  ;;  %v1507_v57 = vmul.f32 -1.442695, %v2115_v49  ;;  %v738_v59 = vadd.f32 %v737_v52, %v689_v50  ;;  %v642_v6 = vadd.f32 %v641_v53, %v2044_v19 }
  0xe8   :  { %v788_v60 = vpop.f32.mrf.mxu0  ;;  %v1630_v61 = vpop.eup %1629  ;;  %v2118_v62 = vadd.f32 1.0, %v1628_v55 }
  0xe9   :  { %v928_v63 = vsel %vm927_vm3, %v1626_v32, %v924_v56  ;;  %v936_v0 = vmul.f32 %v1630_v61, %v905_v34  ;;  %1631 = vpow2.f32 %v1507_v57  ;;  %v787_v4 = vadd.f32 %v786_v31, %v738_v59 }
  0xea   :  { %v933_v1 = vsel %vm930_vm4, %v932_v13, %v928_v63  ;;  %1633 = vrcp.f32 %v2118_v62  ;;  %vm941_vm5 = vweird.f32 %v1630_v61  ;;  %v961_v36 = vand.u32 2147483648, %v2118_v62 }
  0xeb   :  { %v1160_v2 = vmul.f32 %v933_v1, %v2099_v58  ;;  %v937_v3 = vsub.f32 1.0, %v936_v0  ;;  %v824_v11 = vmul.f32 %v2090_v51, %v787_v4  ;;  %vm942_vm7 = vmor %vm940_vm6, %vm941_vm5  ;;  %v959_v45 = vand.u32 2147483647, %v2118_v62 }
  0xec   :  { %v690_v9 = vpop.f32.mrf.mxu2  ;;  %vm955_vm10 = vweird.f32 %v2118_v62  ;;  %v962_v55 = vor.u32 1.1754944e-38, %v961_v36 }
  0xed   :  { %1176 = vst [vmem:[%s2332_s4] sm:$0xff] %v1160_v2  ;;  %v938_v10 = vmul.f32 %v1630_v61, %v937_v3  ;;  %v691_v12 = vadd.f32 %v690_v9, %v642_v6  ;;  %v2128_v20 = vadd.f32 %v2095_v54, %v824_v11  ;;  %vm960_vm12 = vcmp.eq.f32.partialorder %v959_v45, 8.507059e+37 }
  0xee   :  { %v739_v14 = vpop.f32.mrf.mxu3  ;;  %v644_v15 = vpop.f32.mrf.mxu1 }
  0xef   :  { %v1632_v16 = vpop.eup %1631  ;;  %v939_v58 = vadd.f32 %v1630_v61, %v938_v10  ;;  %v740_v25 = vadd.f32 %v739_v14, %v691_v12  ;;  %v1508_v28 = vmul.f32 -1.442695, %v2128_v20  ;;  %v645_v35 = vadd.f32 %v644_v15, %v2074_v33 }
  0xf0   :  { %v791_v19 = vpop.f32.mrf.mxu0  ;;  %v1634_v21 = vpop.eup %1633  ;;  %v2130_v24 = vadd.f32 1.0, %v1632_v16 }
  0xf1   :  { %v943_v26 = vsel %vm942_vm7, %v1630_v61, %v939_v58  ;;  %v951_v27 = vmul.f32 %v1634_v21, %v2118_v62  ;;  %v789_v43 = vadd.f32 %v788_v60, %v740_v25  ;;  %vm956_vm9 = vweird.f32 %v1634_v21 }
  0xf2   :  { %v948_v31 = vsel %vm945_vm8, %v947_v23, %v943_v26  ;;  %1635 = vrcp.f32 %v2130_v24  ;;  %vm957_vm11 = vmor %vm955_vm10, %vm956_vm9  ;;  %v974_v4 = vand.u32 2147483647, %v2130_v24  ;;  %v976_v6 = vand.u32 2147483648, %v2130_v24 }
  0xf3   :  { %v1161_v32 = vmul.f32 %v948_v31, %v2104_v5  ;;  %v952_v34 = vsub.f32 1.0, %v951_v27  ;;  %1637 = vpow2.f32 %v1508_v28  ;;  %v825_v5 = vmul.f32 %v2090_v51, %v789_v43 }
  0xf4   :  { %v693_v40 = vpop.f32.mrf.mxu2  ;;  %vm970_vm14 = vweird.f32 %v2130_v24  ;;  %v977_v16 = vor.u32 1.1754944e-38, %v976_v6  ;;  %vm975_vm0 = vcmp.eq.f32.partialorder %v974_v4, 8.507059e+37 }
  0xf5   :  { %1177 = vst [vmem:[%s2332_s4 + $0x8] sm:$0xff] %v1161_v32  ;;  %v953_v44 = vmul.f32 %v1634_v21, %v952_v34  ;;  %v694_v46 = vadd.f32 %v693_v40, %v645_v35  ;;  %v2145_v56 = vadd.f32 %v2095_v54, %v825_v5 }
  0xf6   :  { %v742_v47 = vpop.f32.mrf.mxu3  ;;  %v646_v48 = vpop.f32.mrf.mxu1 }
  0xf7   :  { %v954_v50 = vadd.f32 %v1634_v21, %v953_v44  ;;  %v743_v33 = vadd.f32 %v742_v47, %v694_v46  ;;  %v1509_v0 = vmul.f32 -1.442695, %v2145_v56  ;;  %v647_v3 = vadd.f32 %v646_v48, %v2081_v39 }
  0xf8   :  { %v793_v52 = vpop.f32.mrf.mxu0  ;;  %v1636_v53 = vpop.eup %1635 }
  0xf9   :  { %v1638_v57 = vpop.eup %1637  ;;  %v958_v59 = vsel %vm957_vm11, %v1634_v21, %v954_v50  ;;  %v966_v60 = vmul.f32 %v1636_v53, %v2130_v24  ;;  %v792_v61 = vadd.f32 %v791_v19, %v743_v33  ;;  %vm971_vm13 = vweird.f32 %v1636_v53 }
  0xfa   :  { %v963_v13 = vsel %vm960_vm12, %v962_v55, %v958_v59  ;;  %v2148_v63 = vadd.f32 1.0, %v1638_v57  ;;  %vm972_vm15 = vmor %vm970_vm14, %vm971_vm13 }
  0xfb   :  { %v1162_v62 = vmul.f32 %v963_v13, %v2109_v22  ;;  %v967_v1 = vsub.f32 1.0, %v966_v60  ;;  %v826_v2 = vmul.f32 %v2090_v51, %v792_v61 }
  0xfc   :  { %1639 = vrcp.f32 %v2148_v63  ;;  %v695_v7 = vpop.f32.mrf.mxu2  ;;  %v991_v40 = vand.u32 2147483648, %v2148_v63  ;;  %vm985_vm2 = vweird.f32 %v2148_v63 }
  0xfd   :  { %1178 = vst [vmem:[%s2332_s4 + $0x10] sm:$0xff] %v1162_v62  ;;  %v968_v8 = vmul.f32 %v1636_v53, %v967_v1  ;;  %1641 = vpow2.f32 %v1509_v0  ;;  %v2161_v22 = vadd.f32 %v2095_v54, %v826_v2  ;;  %v696_v9 = vadd.f32 %v695_v7, %v647_v3 }
  0xfe   :  { %v744_v10 = vpop.f32.mrf.mxu3  ;;  %v649_v39 = vpop.f32.mrf.mxu1 }
  0xff   :  { %v969_v11 = vadd.f32 %v1636_v53, %v968_v8  ;;  %v1510_v12 = vmul.f32 -1.442695, %v2161_v22  ;;  %v745_v14 = vadd.f32 %v744_v10, %v696_v9  ;;  %v650_v28 = vadd.f32 %v649_v39, %v2040_v17 }
 0x100   :  { %v796_v15 = vpop.f32.mrf.mxu0 }
 0x101   :  { %v973_v58 = vsel %vm972_vm15, %v1636_v53, %v969_v11  ;;  %1643 = vpow2.f32 %v1510_v12  ;;  %v794_v19 = vadd.f32 %v793_v52, %v745_v14  ;;  %v992_v52 = vor.u32 1.1754944e-38, %v991_v40 }
 0x102   :  { %v1640_v21 = vpop.eup %1639  ;;  %v978_v23 = vsel %vm975_vm0, %v977_v16, %v973_v58 }
 0x103   :  { %v1642_v25 = vpop.eup %1641  ;;  %v1163_v26 = vmul.f32 %v978_v23, %v2115_v49  ;;  %v981_v27 = vmul.f32 %v1640_v21, %v2148_v63  ;;  %v827_v24 = vmul.f32 %v2090_v51, %v794_v19  ;;  %v989_v49 = vand.u32 2147483647, %v2148_v63 }
 0x104   :  { %v909_v31 = vadd.f32 1.0, %v1642_v25  ;;  %v698_v32 = vpop.f32.mrf.mxu2  ;;  %vm986_vm1 = vweird.f32 %v1640_v21 }
 0x105   :  { %1179 = vst [vmem:[%s2332_s4 + $0x18] sm:$0xff] %v1163_v26  ;;  %v982_v34 = vsub.f32 1.0, %v981_v27  ;;  %v2174_v35 = vadd.f32 %v2095_v54, %v827_v24  ;;  %v699_v36 = vadd.f32 %v698_v32, %v650_v28  ;;  %vm987_vm3 = vmor %vm985_vm2, %vm986_vm1  ;;  %vm990_vm4 = vcmp.eq.f32.partialorder %v989_v49, 8.507059e+37 }
 0x106   :  { %v747_v43 = vpop.f32.mrf.mxu3  ;;  %1645 = vrcp.f32 %v909_v31  ;;  %v651_v44 = vpop.f32.mrf.mxu1  ;;  %v1004_v1 = vand.u32 2147483647, %v909_v31  ;;  %v1006_v8 = vand.u32 2147483648, %v909_v31  ;;  %vm1000_vm6 = vweird.f32 %v909_v31 }
 0x107   :  { %v1644_v45 = vpop.eup %1643  ;;  %v983_v17 = vmul.f32 %v1640_v21, %v982_v34  ;;  %v1511_v46 = vmul.f32 -1.442695, %v2174_v35  ;;  %v748_v47 = vadd.f32 %v747_v43, %v699_v36  ;;  %v652_v60 = vadd.f32 %v651_v44, %v2070_v29 }
 0x108   :  { %v798_v5 = vpop.f32.mrf.mxu0  ;;  %v2179_v48 = vadd.f32 1.0, %v1644_v45  ;;  %vm2196_vm7 = vcmp.eq.f32.partialorder %v1004_v1, 8.507059e+37  ;;  %v1007_v19 = vor.u32 1.1754944e-38, %v1006_v8 }
 0x109   :  { %v984_v50 = vadd.f32 %v1640_v21, %v983_v17  ;;  %1647 = vpow2.f32 %v1511_v46  ;;  %v797_v33 = vadd.f32 %v796_v15, %v748_v47 }
 0x10a   :  { %1649 = vrcp.f32 %v2179_v48  ;;  %v1021_v23 = vand.u32 2147483648, %v2179_v48  ;;  %vm1015_vm10 = vweird.f32 %v2179_v48 }
 0x10b   :  { %v988_v53 = vsel %vm987_vm3, %v1640_v21, %v984_v50  ;;  %v828_v55 = vmul.f32 %v2090_v51, %v797_v33  ;;  %v1019_v21 = vand.u32 2147483647, %v2179_v48 }
 0x10c   :  { %v1646_v57 = vpop.eup %1645  ;;  %v993_v59 = vsel %vm990_vm4, %v992_v52, %v988_v53  ;;  %v700_v61 = vpop.f32.mrf.mxu2  ;;  %v1022_v44 = vor.u32 1.1754944e-38, %v1021_v23 }
 0x10d   :  { %v1164_v13 = vmul.f32 %v993_v59, %v2128_v20  ;;  %v996_v0 = vmul.f32 %v1646_v57, %v909_v31  ;;  %v2187_v63 = vadd.f32 %v2095_v54, %v828_v55  ;;  %v701_v2 = vadd.f32 %v700_v61, %v652_v60 }
 0x10e   :  { %v749_v62 = vpop.f32.mrf.mxu3  ;;  %v654_v3 = vpop.f32.mrf.mxu1  ;;  %vm1001_vm5 = vweird.f32 %v1646_v57  ;;  %vm1020_vm12 = vcmp.eq.f32.partialorder %v1019_v21, 8.507059e+37 }
 0x10f   :  { %v1648_v4 = vpop.eup %1647  ;;  %1180 = vst [vmem:[%s2332_s4 + $0x20] sm:$0xff] %v1164_v13  ;;  %v997_v6 = vsub.f32 1.0, %v996_v0  ;;  %v1512_v7 = vmul.f32 -1.442695, %v2187_v63  ;;  %v750_v20 = vadd.f32 %v749_v62, %v701_v2  ;;  %v655_v58 = vadd.f32 %v654_v3, %v2077_v37  ;;  %vm1002_vm8 = vmor %vm1000_vm6, %vm1001_vm5 }
 0x110   :  { %v1650_v29 = vpop.eup %1649  ;;  %v2193_v9 = vadd.f32 1.0, %v1648_v4  ;;  %v801_v11 = vpop.f32.mrf.mxu0 }
 0x111   :  { %v998_v10 = vmul.f32 %v1646_v57, %v997_v6  ;;  %v1011_v39 = vmul.f32 %v1650_v29, %v2179_v48  ;;  %1651 = vpow2.f32 %v1512_v7  ;;  %v799_v16 = vadd.f32 %v798_v5, %v750_v20 }
 0x112   :  { %1653 = vrcp.f32 %v2193_v9  ;;  %vm1016_vm9 = vweird.f32 %v1650_v29  ;;  %v1036_v53 = vand.u32 2147483648, %v2193_v9  ;;  %v1034_v60 = vand.u32 2147483647, %v2193_v9 }
 0x113   :  { %v999_v14 = vadd.f32 %v1646_v57, %v998_v10  ;;  %v1012_v15 = vsub.f32 1.0, %v1011_v39  ;;  %v829_v24 = vmul.f32 %v2090_v51, %v799_v16  ;;  %vm1017_vm11 = vmor %vm1015_vm10, %vm1016_vm9  ;;  %vm1030_vm14 = vweird.f32 %v2193_v9 }
 0x114   :  { %v703_v25 = vpop.f32.mrf.mxu2  ;;  %v1037_v2 = vor.u32 1.1754944e-38, %v1036_v53  ;;  %vm1035_vm0 = vcmp.eq.f32.partialorder %v1034_v60, 8.507059e+37 }
 0x115   :  { %v1003_v26 = vsel %vm1002_vm8, %v1646_v57, %v999_v14  ;;  %v1013_v27 = vmul.f32 %v1650_v29, %v1012_v15  ;;  %v704_v28 = vadd.f32 %v703_v25, %v655_v58  ;;  %v2210_v49 = vadd.f32 %v2095_v54, %v829_v24 }
 0x116   :  { %v752_v31 = vpop.f32.mrf.mxu3  ;;  %v1008_v32 = vsel %vm2196_vm7, %v1007_v19, %v1003_v26  ;;  %v656_v34 = vpop.f32.mrf.mxu1 }
 0x117   :  { %v1652_v36 = vpop.eup %1651  ;;  %v1165_v37 = vmul.f32 %v1008_v32, %v2145_v56  ;;  %v1014_v43 = vadd.f32 %v1650_v29, %v1013_v27  ;;  %v753_v17 = vadd.f32 %v752_v31, %v704_v28  ;;  %v1513_v47 = vmul.f32 -1.442695, %v2210_v49 }
 0x118   :  { %v1654_v40 = vpop.eup %1653  ;;  %v2213_v45 = vadd.f32 1.0, %v1652_v36  ;;  %v657_v33 = vadd.f32 %v656_v34, %v2083_v41  ;;  %v803_v52 = vpop.f32.mrf.mxu0 }
 0x119   :  { %1181 = vst [vmem:[%s2332_s4 + $0x28] sm:$0xff] %v1165_v37  ;;  %v1018_v46 = vsel %vm1017_vm11, %v1650_v29, %v1014_v43  ;;  %v1026_v56 = vmul.f32 %v1654_v40, %v2193_v9  ;;  %v802_v55 = vadd.f32 %v801_v11, %v753_v17  ;;  %vm1031_vm13 = vweird.f32 %v1654_v40 }
 0x11a   :  { %v1023_v5 = vsel %vm1020_vm12, %v1022_v44, %v1018_v46  ;;  %1655 = vrcp.f32 %v2213_v45  ;;  %vm1032_vm15 = vmor %vm1030_vm14, %vm1031_vm13  ;;  %v1049_v14 = vand.u32 2147483647, %v2213_v45  ;;  %v1051_v15 = vand.u32 2147483648, %v2213_v45 }
 0x11b   :  { %v1166_v48 = vmul.f32 %v1023_v5, %v2161_v22  ;;  %v1027_v50 = vsub.f32 1.0, %v1026_v56  ;;  %1657 = vpow2.f32 %v1513_v47  ;;  %v830_v22 = vmul.f32 %v2090_v51, %v802_v55 }
 0x11c   :  { %v705_v57 = vpop.f32.mrf.mxu2  ;;  %vm1045_vm2 = vweird.f32 %v2213_v45  ;;  %v1052_v24 = vor.u32 1.1754944e-38, %v1051_v15  ;;  %vm1050_vm4 = vcmp.eq.f32.partialorder %v1049_v14, 8.507059e+37 }
 0x11d   :  { %1182 = vst [vmem:[%s2332_s4 + $0x30] sm:$0xff] %v1166_v48  ;;  %v1028_v59 = vmul.f32 %v1654_v40, %v1027_v50  ;;  %v706_v61 = vadd.f32 %v705_v57, %v657_v33  ;;  %v2231_v3 = vadd.f32 %v2095_v54, %v830_v22 }
 0x11e   :  { %v754_v13 = vpop.f32.mrf.mxu3  ;;  %v659_v0 = vpop.f32.mrf.mxu1 }
 0x11f   :  { %v1029_v62 = vadd.f32 %v1654_v40, %v1028_v59  ;;  %v755_v41 = vadd.f32 %v754_v13, %v706_v61  ;;  %v1514_v10 = vmul.f32 -1.442695, %v2231_v3  ;;  %v660_v12 = vadd.f32 %v659_v0, %v2042_v18 }
 0x120   :  { %v1656_v1 = vpop.eup %1655  ;;  %v806_v19 = vpop.f32.mrf.mxu0 }
 0x121   :  { %v1658_v4 = vpop.eup %1657  ;;  %v1033_v6 = vsel %vm1032_vm15, %v1654_v40, %v1029_v62  ;;  %v1041_v7 = vmul.f32 %v1656_v1, %v2213_v45  ;;  %v804_v29 = vadd.f32 %v803_v52, %v755_v41  ;;  %vm1046_vm1 = vweird.f32 %v1656_v1 }
 0x122   :  { %v1038_v8 = vsel %vm1035_vm0, %v1037_v2, %v1033_v6  ;;  %v2234_v20 = vadd.f32 1.0, %v1658_v4  ;;  %vm1047_vm3 = vmor %vm1045_vm2, %vm1046_vm1 }
 0x123   :  { %v1167_v9 = vmul.f32 %v1038_v8, %v2174_v35  ;;  %v1042_v39 = vsub.f32 1.0, %v1041_v7  ;;  %v831_v11 = vmul.f32 %v2090_v51, %v804_v29 }
 0x124   :  { %1659 = vrcp.f32 %v2234_v20  ;;  %v708_v16 = vpop.f32.mrf.mxu2  ;;  %v1066_v48 = vand.u32 2147483648, %v2234_v20  ;;  %vm1060_vm6 = vweird.f32 %v2234_v20 }
 0x125   :  { %1183 = vst [vmem:[%s2332_s4 + $0x38] sm:$0xff] %v1167_v9  ;;  %v1043_v58 = vmul.f32 %v1656_v1, %v1042_v39  ;;  %1661 = vpow2.f32 %v1514_v10  ;;  %v2247_v35 = vadd.f32 %v2095_v54, %v831_v11  ;;  %v709_v21 = vadd.f32 %v708_v16, %v660_v12 }
 0x126   :  { %v757_v18 = vpop.f32.mrf.mxu3  ;;  %v661_v23 = vpop.f32.mrf.mxu1  ;;  %v1067_v61 = vor.u32 1.1754944e-38, %v1066_v48 }
 0x127   :  { %v1044_v25 = vadd.f32 %v1656_v1, %v1043_v58  ;;  %v1515_v26 = vmul.f32 -1.442695, %v2247_v35  ;;  %v758_v27 = vadd.f32 %v757_v18, %v709_v21  ;;  %v662_v44 = vadd.f32 %v661_v23, %v2072_v30 }
 0x128   :  { %v808_v53 = vpop.f32.mrf.mxu0 }
 0x129   :  { %v1048_v28 = vsel %vm1047_vm3, %v1656_v1, %v1044_v25  ;;  %1663 = vpow2.f32 %v1515_v26  ;;  %v807_v31 = vadd.f32 %v806_v19, %v758_v27 }
 0x12a   :  { %v1660_v32 = vpop.eup %1659  ;;  %v1053_v34 = vsel %vm1050_vm4, %v1052_v24, %v1048_v28 }
 0x12b   :  { %v1662_v36 = vpop.eup %1661  ;;  %v1168_v37 = vmul.f32 %v1053_v34, %v2187_v63  ;;  %v1056_v43 = vmul.f32 %v1660_v32, %v2234_v20  ;;  %v832_v40 = vmul.f32 %v2090_v51, %v807_v31  ;;  %v1064_v63 = vand.u32 2147483647, %v2234_v20 }
 0x12c   :  { %v914_v45 = vadd.f32 1.0, %v1662_v36  ;;  %v710_v17 = vpop.f32.mrf.mxu2  ;;  %vm1061_vm5 = vweird.f32 %v1660_v32 }
 0x12d   :  { %1184 = vst [vmem:[%s2332_s4 + $0x40] sm:$0xff] %v1168_v37  ;;  %v1057_v46 = vsub.f32 1.0, %v1056_v43  ;;  %v2260_v56 = vadd.f32 %v2095_v54, %v832_v40  ;;  %v711_v47 = vadd.f32 %v710_v17, %v662_v44  ;;  %vm1062_vm7 = vmor %vm1060_vm6, %vm1061_vm5  ;;  %vm1065_vm8 = vcmp.eq.f32.partialorder %v1064_v63, 8.507059e+37 }
 0x12e   :  { %v759_v5 = vpop.f32.mrf.mxu3  ;;  %1665 = vrcp.f32 %v914_v45  ;;  %v664_v50 = vpop.f32.mrf.mxu1  ;;  %v1079_v29 = vand.u32 2147483647, %v914_v45  ;;  %vm1075_vm10 = vweird.f32 %v914_v45 }
 0x12f   :  { %v1664_v33 = vpop.eup %1663  ;;  %v1058_v30 = vmul.f32 %v1660_v32, %v1057_v46  ;;  %v1516_v52 = vmul.f32 -1.442695, %v2260_v56  ;;  %v760_v55 = vadd.f32 %v759_v5, %v711_v47  ;;  %v665_v41 = vadd.f32 %v664_v50, %v2079_v38 }
 0x130   :  { %v2265_v57 = vadd.f32 1.0, %v1664_v33  ;;  %v1081_v38 = vand.u32 2147483648, %v914_v45  ;;  %v811_v16 = vpop.f32.mrf.mxu0  ;;  %vm2282_vm11 = vcmp.eq.f32.partialorder %v1079_v29, 8.507059e+37 }
 0x131   :  { %v1059_v59 = vadd.f32 %v1660_v32, %v1058_v30  ;;  %1667 = vpow2.f32 %v1516_v52  ;;  %v809_v60 = vadd.f32 %v808_v53, %v760_v55 }
 0x132   :  { %1669 = vrcp.f32 %v2265_v57  ;;  %v1082_v25 = vor.u32 1.1754944e-38, %v1081_v38  ;;  %v1094_v26 = vand.u32 2147483647, %v2265_v57  ;;  %v1096_v27 = vand.u32 2147483648, %v2265_v57 }
 0x133   :  { %v1063_v13 = vsel %vm1062_vm7, %v1660_v32, %v1059_v59  ;;  %v833_v22 = vmul.f32 %v2090_v51, %v809_v60  ;;  %vm1090_vm14 = vweird.f32 %v2265_v57 }
 0x134   :  { %v1666_v0 = vpop.eup %1665  ;;  %v1068_v62 = vsel %vm1065_vm8, %v1067_v61, %v1063_v13  ;;  %v713_v1 = vpop.f32.mrf.mxu2  ;;  %v1097_v17 = vor.u32 1.1754944e-38, %v1096_v27  ;;  %vm1095_vm0 = vcmp.eq.f32.partialorder %v1094_v26, 8.507059e+37 }
 0x135   :  { %v1169_v2 = vmul.f32 %v1068_v62, %v2210_v49  ;;  %v1071_v4 = vmul.f32 %v1666_v0, %v914_v45  ;;  %v2273_v6 = vadd.f32 %v2095_v54, %v833_v22  ;;  %v714_v8 = vadd.f32 %v713_v1, %v665_v41 }
 0x136   :  { %v762_v7 = vpop.f32.mrf.mxu3  ;;  %v666_v12 = vpop.f32.mrf.mxu1  ;;  %vm1076_vm9 = vweird.f32 %v1666_v0 }
 0x137   :  { %v1668_v20 = vpop.eup %1667  ;;  %1185 = vst [vmem:[%s2332_s4 + $0x48] sm:$0xff] %v1169_v2  ;;  %v1072_v10 = vsub.f32 1.0, %v1071_v4  ;;  %v1517_v9 = vmul.f32 -1.442695, %v2273_v6  ;;  %v763_v49 = vadd.f32 %v762_v7, %v714_v8  ;;  %v667_v23 = vadd.f32 %v666_v12, %v2085_v42  ;;  %vm1077_vm12 = vmor %vm1075_vm10, %vm1076_vm9 }
 0x138   :  { %v1670_v39 = vpop.eup %1669  ;;  %v2279_v11 = vadd.f32 1.0, %v1668_v20  ;;  %v813_v30 = vpop.f32.mrf.mxu0 }
 0x139   :  { %v1073_v14 = vmul.f32 %v1666_v0, %v1072_v10  ;;  %v1086_v15 = vmul.f32 %v1670_v39, %v2265_v57  ;;  %1671 = vpow2.f32 %v1517_v9  ;;  %v812_v18 = vadd.f32 %v811_v16, %v763_v49 }
 0x13a   :  { %1673 = vrcp.f32 %v2279_v11  ;;  %vm1091_vm13 = vweird.f32 %v1670_v39  ;;  %v1111_v52 = vand.u32 2147483648, %v2279_v11  ;;  %v1109_v57 = vand.u32 2147483647, %v2279_v11 }
 0x13b   :  { %v1074_v19 = vadd.f32 %v1666_v0, %v1073_v14  ;;  %v1087_v21 = vsub.f32 1.0, %v1086_v15  ;;  %v834_v32 = vmul.f32 %v2090_v51, %v812_v18  ;;  %vm1092_vm15 = vmor %vm1090_vm14, %vm1091_vm13  ;;  %vm1105_vm2 = vweird.f32 %v2279_v11 }
 0x13c   :  { %v715_v24 = vpop.f32.mrf.mxu2  ;;  %v1112_v61 = vor.u32 1.1754944e-38, %v1111_v52  ;;  %vm1110_vm4 = vcmp.eq.f32.partialorder %v1109_v57, 8.507059e+37 }
 0x13d   :  { %v1078_v28 = vsel %vm1077_vm12, %v1666_v0, %v1074_v19  ;;  %v1088_v31 = vmul.f32 %v1670_v39, %v1087_v21  ;;  %v716_v34 = vadd.f32 %v715_v24, %v667_v23  ;;  %v2296_v40 = vadd.f32 %v2095_v54, %v834_v32 }
 0x13e   :  { %v1083_v36 = vsel %vm2282_vm11, %v1082_v25, %v1078_v28  ;;  %v764_v44 = vpop.f32.mrf.mxu3 }
 0x13f   :  { %v1672_v37 = vpop.eup %1671  ;;  %v1170_v43 = vmul.f32 %v1083_v36, %v2231_v3  ;;  %v1089_v42 = vadd.f32 %v1670_v39, %v1088_v31  ;;  %v765_v47 = vadd.f32 %v764_v44, %v716_v34  ;;  %v1518_v63 = vmul.f32 -1.442695, %v2296_v40 }
 0x140   :  { %v1674_v45 = vpop.eup %1673  ;;  %v917_v46 = vadd.f32 1.0, %v1672_v37 }
 0x141   :  { %1186 = vst [vmem:[%s2332_s4 + $0x50] sm:$0xff] %v1170_v43  ;;  %v1093_v5 = vsel %vm1092_vm15, %v1670_v39, %v1089_v42  ;;  %v1101_v3 = vmul.f32 %v1674_v45, %v2279_v11  ;;  %v814_v53 = vadd.f32 %v813_v30, %v765_v47  ;;  %vm1106_vm1 = vweird.f32 %v1674_v45 }
 0x142   :  { %v1098_v48 = vsel %vm1095_vm0, %v1097_v17, %v1093_v5  ;;  %1675 = vrcp.f32 %v917_v46  ;;  %vm1107_vm3 = vmor %vm1105_vm2, %vm1106_vm1  ;;  %v1126_v29 = vand.u32 2147483648, %v917_v46  ;;  %v1124_v8 = vand.u32 2147483647, %v917_v46 }
 0x143   :  { %v1171_v50 = vmul.f32 %v1098_v48, %v2247_v35  ;;  %v1102_v33 = vsub.f32 1.0, %v1101_v3  ;;  %1677 = vpow2.f32 %v1518_v63  ;;  %v835_v59 = vmul.f32 %v2090_v51, %v814_v53 }
 0x144   :  { %vm1120_vm6 = vweird.f32 %v917_v46  ;;  %v1127_v20 = vor.u32 1.1754944e-38, %v1126_v29  ;;  %vm1125_vm8 = vcmp.eq.f32.partialorder %v1124_v8, 8.507059e+37 }
 0x145   :  { %1187 = vst [vmem:[%s2332_s4 + $0x58] sm:$0xff] %v1171_v50  ;;  %v1103_v55 = vmul.f32 %v1674_v45, %v1102_v33  ;;  %v855_v13 = vadd.f32 %v2095_v54, %v835_v59 }
 0x147   :  { %v1104_v60 = vadd.f32 %v1674_v45, %v1103_v55  ;;  %v1519_v2 = vmul.f32 -1.442695, %v855_v13 }
 0x148   :  { %v1676_v35 = vpop.eup %1675 }
 0x149   :  { %v1678_v22 = vpop.eup %1677  ;;  %v1108_v0 = vsel %vm1107_vm3, %v1674_v45, %v1104_v60  ;;  %v1116_v62 = vmul.f32 %v1676_v35, %v917_v46  ;;  %vm1121_vm5 = vweird.f32 %v1676_v35 }
 0x14a   :  { %v1113_v41 = vsel %vm1110_vm4, %v1112_v61, %v1108_v0  ;;  %v918_v1 = vadd.f32 1.0, %v1678_v22  ;;  %vm1122_vm7 = vmor %vm1120_vm6, %vm1121_vm5 }
 0x14b   :  { %v1172_v4 = vmul.f32 %v1113_v41, %v2260_v56  ;;  %v1117_v7 = vsub.f32 1.0, %v1116_v62 }
 0x14c   :  { %1679 = vrcp.f32 %v918_v1  ;;  %v1141_v14 = vand.u32 2147483648, %v918_v1  ;;  %v1139_v16 = vand.u32 2147483647, %v918_v1  ;;  %vm1135_vm10 = vweird.f32 %v918_v1 }
 0x14d   :  { %1188 = vst [vmem:[%s2332_s4 + $0x60] sm:$0xff] %v1172_v4  ;;  %v1118_v51 = vmul.f32 %v1676_v35, %v1117_v7  ;;  %1681 = vpow2.f32 %v1519_v2 }
 0x14e   :  { %v1142_v19 = vor.u32 1.1754944e-38, %v1141_v14  ;;  %vm1140_vm12 = vcmp.eq.f32.partialorder %v1139_v16, 8.507059e+37 }
 0x14f   :  { %v1119_v54 = vadd.f32 %v1676_v35, %v1118_v51 }
 0x151   :  { %v1123_v10 = vsel %vm1122_vm7, %v1676_v35, %v1119_v54 }
 0x152   :  { %v1680_v9 = vpop.eup %1679  ;;  %v1128_v39 = vsel %vm1125_vm8, %v1127_v20, %v1123_v10 }
 0x153   :  { %v1682_v56 = vpop.eup %1681  ;;  %v1173_v38 = vmul.f32 %v1128_v39, %v2273_v6  ;;  %v1131_v11 = vmul.f32 %v1680_v9, %v918_v1  ;;  %vm1136_vm9 = vweird.f32 %v1680_v9 }
 0x154   :  { %v919_v49 = vadd.f32 1.0, %v1682_v56  ;;  %vm1137_vm11 = vmor %vm1135_vm10, %vm1136_vm9 }
 0x155   :  { %1189 = vst [vmem:[%s2332_s4 + $0x68] sm:$0xff] %v1173_v38  ;;  %v1132_v12 = vsub.f32 1.0, %v1131_v11 }
 0x156   :  { %1683 = vrcp.f32 %v919_v49  ;;  %v1156_v27 = vand.u32 2147483648, %v919_v49  ;;  %v1154_v28 = vand.u32 2147483647, %v919_v49  ;;  %vm1150_vm14 = vweird.f32 %v919_v49 }
 0x157   :  { %v1133_v15 = vmul.f32 %v1680_v9, %v1132_v12 }
 0x158   :  { %v1157_v32 = vor.u32 1.1754944e-38, %v1156_v27  ;;  %vm1155_vm0 = vcmp.eq.f32.partialorder %v1154_v28, 8.507059e+37 }
 0x159   :  { %v1134_v58 = vadd.f32 %v1680_v9, %v1133_v15 }
 0x15b   :  { %v1138_v21 = vsel %vm1137_vm11, %v1680_v9, %v1134_v58 }
 0x15c   :  { %v1684_v18 = vpop.eup %1683  ;;  %v1143_v6 = vsel %vm1140_vm12, %v1142_v19, %v1138_v21 }
 0x15d   :  { %v1174_v23 = vmul.f32 %v1143_v6, %v2296_v40  ;;  %v1146_v25 = vmul.f32 %v1684_v18, %v919_v49  ;;  %vm1151_vm13 = vweird.f32 %v1684_v18 }
 0x15e   :  { %vm1152_vm15 = vmor %vm1150_vm14, %vm1151_vm13 }
 0x15f   :  { %1190 = vst [vmem:[%s2332_s4 + $0x70] sm:$0xff] %v1174_v23  ;;  %v1147_v26 = vsub.f32 1.0, %v1146_v25 }
 0x161   :  { %v1148_v24 = vmul.f32 %v1684_v18, %v1147_v26 }
 0x163   :  { %v1149_v31 = vadd.f32 %v1684_v18, %v1148_v24 }
 0x165   :  { %v1153_v34 = vsel %vm1152_vm15, %v1684_v18, %v1149_v31 }
 0x166   :  { %v1158_v36 = vsel %vm1155_vm0, %v1157_v32, %v1153_v34 }
 0x167   :  { %v1175_v37 = vmul.f32 %v1158_v36, %v855_v13 }
 0x169   :  { %1191 = vst [vmem:[%s2332_s4 + $0x78] sm:$0xff] %v1175_v37 }

</bundles_post_ra>
